<compile_context>
chip_gen: v7x
topology: tpu7x:2x2x1
jax: 0.10.0
libtpu: 0.0.40
codegen_flags: <defaults>
</compile_context>

<pallas_src>
import jax
import jax.numpy as jnp
from jax.experimental import pallas as pl
from jax.experimental.pallas import tpu as pltpu

C_BLK = 512        # per-input channel count (concat fused: 3 x 512 = 1536)
C_HID = 512
C_OUT_PAD = 128    # convC has 1 output channel; pad to a lane-dense 128 slab
TM_MAX = 256       # row-tile size (multiple of 128) -> bounded VMEM + pipelining
SUB = 16           # bf16 sublane quantum for small-M padding


def _round_up(x, m):
    return ((x + m - 1) // m) * m


def regressor_kernel(x1_ref, x2_ref, x3_ref,
                     wa1_ref, wa2_ref, wa3_ref, ba_ref,
                     wb_ref, bb_ref, wc_ref, bc_ref, o_ref):
    # convA (1x1) on the fused concat:  [x1|x2|x3] @ wa == x1@wa1 + x2@wa2 + x3@wa3
    h = jnp.dot(x1_ref[...], wa1_ref[...], preferred_element_type=jnp.float32)
    h = h + jnp.dot(x2_ref[...], wa2_ref[...], preferred_element_type=jnp.float32)
    h = h + jnp.dot(x3_ref[...], wa3_ref[...], preferred_element_type=jnp.float32)
    h = jnp.maximum(h + ba_ref[...], 0.0).astype(jnp.bfloat16)          # ReLU
    # convB (1x1) + ReLU
    h = jnp.dot(h, wb_ref[...], preferred_element_type=jnp.float32) + bb_ref[...]
    h = jnp.maximum(h, 0.0).astype(jnp.bfloat16)
    # Dropout(p=0.5): eval-mode identity (no-op)
    # convC (1x1 -> 1 channel, zero-padded to 128 lanes) + Tanh
    y = jnp.dot(h, wc_ref[...], preferred_element_type=jnp.float32) + bc_ref[...]
    o_ref[...] = jnp.tanh(y)


def regressor_pallas(x1, x2, x3, kparams, tm):
    wa1, wa2, wa3, ba, wb, bb, wc, bc = kparams
    m_pad = x1.shape[0]
    grid = (m_pad // tm,)
    row = lambda i: (i, 0)          # row-tiled slabs / output
    const = lambda i: (0, 0)        # weights & biases stay VMEM-resident
    return pl.pallas_call(
        regressor_kernel,
        out_shape=jax.ShapeDtypeStruct((m_pad, C_OUT_PAD), jnp.float32),
        grid=grid,
        in_specs=[
            pl.BlockSpec((tm, C_BLK), row),
            pl.BlockSpec((tm, C_BLK), row),
            pl.BlockSpec((tm, C_BLK), row),
            pl.BlockSpec((C_BLK, C_HID), const),
            pl.BlockSpec((C_BLK, C_HID), const),
            pl.BlockSpec((C_BLK, C_HID), const),
            pl.BlockSpec((1, C_HID), const),
            pl.BlockSpec((C_HID, C_HID), const),
            pl.BlockSpec((1, C_HID), const),
            pl.BlockSpec((C_HID, C_OUT_PAD), const),
            pl.BlockSpec((1, C_OUT_PAD), const),
        ],
        out_specs=pl.BlockSpec((tm, C_OUT_PAD), row),
        compiler_params=pltpu.CompilerParams(
            dimension_semantics=("parallel",),
            vmem_limit_bytes=32 << 20,
        ),
    )(x1, x2, x3, wa1, wa2, wa3, ba, wb, bb, wc, bc)


def _to_slab(x, m_pad):
    """NCHW (N, 512, H, W) -> channel-last (m_pad, 512) bf16 slab."""
    N, C, H, W = x.shape
    x2d = jnp.transpose(x, (0, 2, 3, 1)).reshape(N * H * W, C)
    x2d = jnp.pad(x2d, ((0, m_pad - N * H * W), (0, 0)))
    return x2d.astype(jnp.bfloat16)


@jax.jit
def local_regressor_test_forward(x_1_1, x_1_2, x_2, kparams):
    """Local_Regressor.forward(phase='test'). Inputs are NCHW, each (N,512,H,W)."""
    N, C, H, W = x_1_1.shape
    M = N * H * W
    tm = TM_MAX if M > TM_MAX else _round_up(M, SUB)
    m_pad = _round_up(M, tm)
    x1 = _to_slab(x_1_1, m_pad)
    x2 = _to_slab(x_1_2, m_pad)
    x3 = _to_slab(x_2, m_pad)
    out = regressor_pallas(x1, x2, x3, kparams, tm)          # (m_pad, 128) f32
    y = out[:M, :1]                                          # real rows / channel
    return y.reshape(N, H, W, 1).transpose(0, 3, 1, 2)       # NCHW (N, 1, H, W)


def init_params(key):
    """f32 'reference' parameters in matmul layout."""
    ks = jax.random.split(key, 6)
    c_in = 3 * C_BLK
    wa = jax.random.normal(ks[0], (c_in, C_HID), jnp.float32) / (c_in ** 0.5)
    ba = jax.random.normal(ks[1], (1, C_HID), jnp.float32) * 0.01
    wb = jax.random.normal(ks[2], (C_HID, C_HID), jnp.float32) / (C_HID ** 0.5)
    bb = jax.random.normal(ks[3], (1, C_HID), jnp.float32) * 0.01
    wc = jax.random.normal(ks[4], (C_HID, 1), jnp.float32) / (C_HID ** 0.5)
    bc = jax.random.normal(ks[5], (1, 1), jnp.float32) * 0.01
    return (wa, ba, wb, bb, wc, bc)


def prepare_kernel_params(params):
    """Split convA over the 3 concat blocks, cast weights to bf16, pad convC."""
    wa, ba, wb, bb, wc, bc = params
    wa1 = wa[0 * C_BLK:1 * C_BLK].astype(jnp.bfloat16)
    wa2 = wa[1 * C_BLK:2 * C_BLK].astype(jnp.bfloat16)
    wa3 = wa[2 * C_BLK:3 * C_BLK].astype(jnp.bfloat16)
    wc_p = jnp.pad(wc, ((0, 0), (0, C_OUT_PAD - 1))).astype(jnp.bfloat16)
    bc_p = jnp.pad(bc, ((0, 0), (0, C_OUT_PAD - 1))).astype(jnp.float32)
    return (wa1, wa2, wa3, ba.astype(jnp.float32),
            wb.astype(jnp.bfloat16), bb.astype(jnp.float32), wc_p, bc_p)


def reference_forward(x_1_1, x_1_2, x_2, params):
    """Pure-JAX f32 reference of the 'test'-phase forward."""
    wa, ba, wb, bb, wc, bc = params
    x = jnp.concatenate([x_1_1, x_1_2, x_2], axis=1)
    N, C, H, W = x.shape
    x2d = jnp.transpose(x, (0, 2, 3, 1)).reshape(N * H * W, C)
    h = jnp.maximum(x2d @ wa + ba, 0.0)
    h = jnp.maximum(h @ wb + bb, 0.0)
    y = jnp.tanh(h @ wc + bc)
    return y.reshape(N, H, W, 1).transpose(0, 3, 1, 2)


def _run_case(key, N, H, W, params, kparams):
    k1, k2, k3 = jax.random.split(key, 3)
    x_1_1 = jax.random.normal(k1, (N, C_BLK, H, W), jnp.float32)
    x_1_2 = jax.random.normal(k2, (N, C_BLK, H, W), jnp.float32)
    x_2 = jax.random.normal(k3, (N, C_BLK, H, W), jnp.float32)

    out = local_regressor_test_forward(x_1_1, x_1_2, x_2, kparams)
    out = jax.block_until_ready(out)
    ref = reference_forward(x_1_1, x_1_2, x_2, params)

    assert out.shape == (N, 1, H, W), out.shape
    max_err = float(jnp.max(jnp.abs(out - ref)))
    # bf16 weights/activations with f32 accumulation -> loosened tolerance.
    assert jnp.allclose(out, ref, atol=5e-2, rtol=5e-2), (
        f"mismatch vs reference (N={N},H={H},W={W}): max abs err = {max_err}")


if __name__ == "__main__":
    key = jax.random.PRNGKey(0)
    kp, ka, kb = jax.random.split(key, 3)

    params = init_params(kp)
    kparams = prepare_kernel_params(params)

    # Case 1: tiny test-phase shape (post AvgPool2d(7) VGG features -> 1x1 spatial).
    _run_case(ka, N=2, H=1, W=1, params=params, kparams=kparams)

    # Case 2: larger spatial map -> M = 512 rows, exercises the 2-step parallel
    # row grid (TM=256) and the pipelined / multi-TC path.
    _run_case(kb, N=2, H=16, W=16, params=params, kparams=kparams)

    print("KERNEL_OK")
</pallas_src>

<mosaic_0001>
module attributes {stable_mosaic.version = 11 : i64} {
  func.func @regressor_kernel(%arg0: i32, %arg1: memref<16x512xbf16, #tpu.memory_space<vmem>>, %arg2: memref<16x512xbf16, #tpu.memory_space<vmem>>, %arg3: memref<16x512xbf16, #tpu.memory_space<vmem>>, %arg4: memref<512x512xbf16, #tpu.memory_space<vmem>>, %arg5: memref<512x512xbf16, #tpu.memory_space<vmem>>, %arg6: memref<512x512xbf16, #tpu.memory_space<vmem>>, %arg7: memref<1x512xf32, #tpu.memory_space<vmem>>, %arg8: memref<512x512xbf16, #tpu.memory_space<vmem>>, %arg9: memref<1x512xf32, #tpu.memory_space<vmem>>, %arg10: memref<512x128xbf16, #tpu.memory_space<vmem>>, %arg11: memref<1x128xf32, #tpu.memory_space<vmem>>, %arg12: memref<16x128xf32, #tpu.memory_space<vmem>>) attributes {dimension_semantics = [#tpu.dimension_semantics<parallel>], iteration_bounds = array<i64: 1>, scalar_prefetch = 0 : i64, scratch_operands = 0 : i64, tpu.core_type = #tpu.core_type<tc>, window_params = [{transform_indices = @transform_0, window_bounds = array<i64: 16, 512>}, {transform_indices = @transform_1, window_bounds = array<i64: 16, 512>}, {transform_indices = @transform_2, window_bounds = array<i64: 16, 512>}, {pipeline_mode = #tpu.pipeline_mode<synchronous>, transform_indices = @transform_3, window_bounds = array<i64: 512, 512>}, {pipeline_mode = #tpu.pipeline_mode<synchronous>, transform_indices = @transform_4, window_bounds = array<i64: 512, 512>}, {pipeline_mode = #tpu.pipeline_mode<synchronous>, transform_indices = @transform_5, window_bounds = array<i64: 512, 512>}, {pipeline_mode = #tpu.pipeline_mode<synchronous>, transform_indices = @transform_6, window_bounds = array<i64: 1, 512>}, {pipeline_mode = #tpu.pipeline_mode<synchronous>, transform_indices = @transform_7, window_bounds = array<i64: 512, 512>}, {pipeline_mode = #tpu.pipeline_mode<synchronous>, transform_indices = @transform_8, window_bounds = array<i64: 1, 512>}, {pipeline_mode = #tpu.pipeline_mode<synchronous>, transform_indices = @transform_9, window_bounds = array<i64: 512, 128>}, {pipeline_mode = #tpu.pipeline_mode<synchronous>, transform_indices = @transform_10, window_bounds = array<i64: 1, 128>}, {transform_indices = @transform_11, window_bounds = array<i64: 16, 128>}]} {
    %c0 = arith.constant 0 : index
    %c0_0 = arith.constant 0 : index
    %0 = vector.load %arg1[%c0, %c0_0] : memref<16x512xbf16, #tpu.memory_space<vmem>>, vector<16x512xbf16>
    %c0_1 = arith.constant 0 : index
    %c0_2 = arith.constant 0 : index
    %1 = vector.load %arg4[%c0_1, %c0_2] : memref<512x512xbf16, #tpu.memory_space<vmem>>, vector<512x512xbf16>
    %cst = arith.constant dense<0.000000e+00> : vector<16x512xf32>
    %2 = tpu.matmul %0, %1, %cst {dimension_numbers = #tpu.dot_dimension_numbers<[1], [0], [0], [1], [0, 0, 1, 1], [], []>} : vector<16x512xbf16>, vector<512x512xbf16>, vector<16x512xf32> -> vector<16x512xf32>
    %c0_3 = arith.constant 0 : index
    %c0_4 = arith.constant 0 : index
    %3 = vector.load %arg2[%c0_3, %c0_4] : memref<16x512xbf16, #tpu.memory_space<vmem>>, vector<16x512xbf16>
    %c0_5 = arith.constant 0 : index
    %c0_6 = arith.constant 0 : index
    %4 = vector.load %arg5[%c0_5, %c0_6] : memref<512x512xbf16, #tpu.memory_space<vmem>>, vector<512x512xbf16>
    %cst_7 = arith.constant dense<0.000000e+00> : vector<16x512xf32>
    %5 = tpu.matmul %3, %4, %cst_7 {dimension_numbers = #tpu.dot_dimension_numbers<[1], [0], [0], [1], [0, 0, 1, 1], [], []>} : vector<16x512xbf16>, vector<512x512xbf16>, vector<16x512xf32> -> vector<16x512xf32>
    %6 = arith.addf %2, %5 : vector<16x512xf32>
    %c0_8 = arith.constant 0 : index
    %c0_9 = arith.constant 0 : index
    %7 = vector.load %arg3[%c0_8, %c0_9] : memref<16x512xbf16, #tpu.memory_space<vmem>>, vector<16x512xbf16>
    %c0_10 = arith.constant 0 : index
    %c0_11 = arith.constant 0 : index
    %8 = vector.load %arg6[%c0_10, %c0_11] : memref<512x512xbf16, #tpu.memory_space<vmem>>, vector<512x512xbf16>
    %cst_12 = arith.constant dense<0.000000e+00> : vector<16x512xf32>
    %9 = tpu.matmul %7, %8, %cst_12 {dimension_numbers = #tpu.dot_dimension_numbers<[1], [0], [0], [1], [0, 0, 1, 1], [], []>} : vector<16x512xbf16>, vector<512x512xbf16>, vector<16x512xf32> -> vector<16x512xf32>
    %10 = arith.addf %6, %9 : vector<16x512xf32>
    %c0_13 = arith.constant 0 : index
    %c0_14 = arith.constant 0 : index
    %11 = vector.load %arg7[%c0_13, %c0_14] : memref<1x512xf32, #tpu.memory_space<vmem>>, vector<1x512xf32>
    %12 = vector.broadcast %11 : vector<1x512xf32> to vector<16x512xf32>
    %13 = arith.addf %10, %12 : vector<16x512xf32>
    %cst_15 = arith.constant 0.000000e+00 : f32
    %14 = vector.broadcast %cst_15 : f32 to vector<16x512xf32>
    %15 = arith.maximumf %13, %14 : vector<16x512xf32>
    %16 = arith.truncf %15 : vector<16x512xf32> to vector<16x512xbf16>
    %c0_16 = arith.constant 0 : index
    %c0_17 = arith.constant 0 : index
    %17 = vector.load %arg8[%c0_16, %c0_17] : memref<512x512xbf16, #tpu.memory_space<vmem>>, vector<512x512xbf16>
    %cst_18 = arith.constant dense<0.000000e+00> : vector<16x512xf32>
    %18 = tpu.matmul %16, %17, %cst_18 {dimension_numbers = #tpu.dot_dimension_numbers<[1], [0], [0], [1], [0, 0, 1, 1], [], []>} : vector<16x512xbf16>, vector<512x512xbf16>, vector<16x512xf32> -> vector<16x512xf32>
    %c0_19 = arith.constant 0 : index
    %c0_20 = arith.constant 0 : index
    %19 = vector.load %arg9[%c0_19, %c0_20] : memref<1x512xf32, #tpu.memory_space<vmem>>, vector<1x512xf32>
    %20 = vector.broadcast %19 : vector<1x512xf32> to vector<16x512xf32>
    %21 = arith.addf %18, %20 : vector<16x512xf32>
    %cst_21 = arith.constant 0.000000e+00 : f32
    %22 = vector.broadcast %cst_21 : f32 to vector<16x512xf32>
    %23 = arith.maximumf %21, %22 : vector<16x512xf32>
    %24 = arith.truncf %23 : vector<16x512xf32> to vector<16x512xbf16>
    %c0_22 = arith.constant 0 : index
    %c0_23 = arith.constant 0 : index
    %25 = vector.load %arg10[%c0_22, %c0_23] : memref<512x128xbf16, #tpu.memory_space<vmem>>, vector<512x128xbf16>
    %cst_24 = arith.constant dense<0.000000e+00> : vector<16x128xf32>
    %26 = tpu.matmul %24, %25, %cst_24 {dimension_numbers = #tpu.dot_dimension_numbers<[1], [0], [0], [1], [0, 0, 1, 1], [], []>} : vector<16x512xbf16>, vector<512x128xbf16>, vector<16x128xf32> -> vector<16x128xf32>
    %c0_25 = arith.constant 0 : index
    %c0_26 = arith.constant 0 : index
    %27 = vector.load %arg11[%c0_25, %c0_26] : memref<1x128xf32, #tpu.memory_space<vmem>>, vector<1x128xf32>
    %28 = vector.broadcast %27 : vector<1x128xf32> to vector<16x128xf32>
    %29 = arith.addf %26, %28 : vector<16x128xf32>
    %30 = math.tanh %29 : vector<16x128xf32>
    %c0_27 = arith.constant 0 : index
    %c0_28 = arith.constant 0 : index
    %31 = vector.load %arg12[%c0_27, %c0_28] : memref<16x128xf32, #tpu.memory_space<vmem>>, vector<16x128xf32>
    tpu.vector_store %arg12[%c0_27, %c0_28], %30 {strides = array<i32>} : memref<16x128xf32, #tpu.memory_space<vmem>>, vector<16x128xf32>,
    return
  }
  func.func @transform_0(%arg0: i32) -> (i32, i32) {
    %c0_i32 = arith.constant 0 : i32
    %c0_i32_0 = arith.constant 0 : i32
    return %arg0, %c0_i32 : i32, i32
  }
  func.func @transform_1(%arg0: i32) -> (i32, i32) {
    %c0_i32 = arith.constant 0 : i32
    %c0_i32_0 = arith.constant 0 : i32
    return %arg0, %c0_i32 : i32, i32
  }
  func.func @transform_2(%arg0: i32) -> (i32, i32) {
    %c0_i32 = arith.constant 0 : i32
    %c0_i32_0 = arith.constant 0 : i32
    return %arg0, %c0_i32 : i32, i32
  }
  func.func @transform_3(%arg0: i32) -> (i32, i32) {
    %c0_i32 = arith.constant 0 : i32
    %c0_i32_0 = arith.constant 0 : i32
    %c0_i32_1 = arith.constant 0 : i32
    return %c0_i32, %c0_i32_0 : i32, i32
  }
  func.func @transform_4(%arg0: i32) -> (i32, i32) {
    %c0_i32 = arith.constant 0 : i32
    %c0_i32_0 = arith.constant 0 : i32
    %c0_i32_1 = arith.constant 0 : i32
    return %c0_i32, %c0_i32_0 : i32, i32
  }
  func.func @transform_5(%arg0: i32) -> (i32, i32) {
    %c0_i32 = arith.constant 0 : i32
    %c0_i32_0 = arith.constant 0 : i32
    %c0_i32_1 = arith.constant 0 : i32
    return %c0_i32, %c0_i32_0 : i32, i32
  }
  func.func @transform_6(%arg0: i32) -> (i32, i32) {
    %c0_i32 = arith.constant 0 : i32
    %c0_i32_0 = arith.constant 0 : i32
    %c0_i32_1 = arith.constant 0 : i32
    return %c0_i32, %c0_i32_0 : i32, i32
  }
  func.func @transform_7(%arg0: i32) -> (i32, i32) {
    %c0_i32 = arith.constant 0 : i32
    %c0_i32_0 = arith.constant 0 : i32
    %c0_i32_1 = arith.constant 0 : i32
    return %c0_i32, %c0_i32_0 : i32, i32
  }
  func.func @transform_8(%arg0: i32) -> (i32, i32) {
    %c0_i32 = arith.constant 0 : i32
    %c0_i32_0 = arith.constant 0 : i32
    %c0_i32_1 = arith.constant 0 : i32
    return %c0_i32, %c0_i32_0 : i32, i32
  }
  func.func @transform_9(%arg0: i32) -> (i32, i32) {
    %c0_i32 = arith.constant 0 : i32
    %c0_i32_0 = arith.constant 0 : i32
    %c0_i32_1 = arith.constant 0 : i32
    return %c0_i32, %c0_i32_0 : i32, i32
  }
  func.func @transform_10(%arg0: i32) -> (i32, i32) {
    %c0_i32 = arith.constant 0 : i32
    %c0_i32_0 = arith.constant 0 : i32
    %c0_i32_1 = arith.constant 0 : i32
    return %c0_i32, %c0_i32_0 : i32, i32
  }
  func.func @transform_11(%arg0: i32) -> (i32, i32) {
    %c0_i32 = arith.constant 0 : i32
    %c0_i32_0 = arith.constant 0 : i32
    return %arg0, %c0_i32 : i32, i32
  }
}

</mosaic_0001>

<bundles_post_ra>
// kernel: local_regressor_test_forward.1
= control target key start
LH: loop header
LB: loop body
LE: loop exit
PB: predicated region body
PF: predicated region fallthrough
CT: control target
= control target key end

     0   :  { %16 = vsyncpa [#allocation3], 0  ;;  %s6215_s0 = inlined_call_operand.vmem [shape: bf16[16,512], index: 0, kind: input, shape index: {}]   ;;  %s6216_s1 = inlined_call_operand.vmem [shape: bf16[16,512], index: 1, kind: input, shape index: {}]   ;;  %s6217_s2 = inlined_call_operand.vmem [shape: bf16[16,512], index: 2, kind: input, shape index: {}]   ;;  %s6218_s3 = inlined_call_operand.hbm [shape: bf16[512,512], index: 3, kind: input, shape index: {}]   ;;  %s6219_s4 = inlined_call_operand.hbm [shape: bf16[512,512], index: 4, kind: input, shape index: {}]   ;;  %s6220_s5 = inlined_call_operand.hbm [shape: bf16[512,512], index: 5, kind: input, shape index: {}]   ;;  %s6221_s6 = inlined_call_operand.vmem [shape: f32[1,512], index: 6, kind: input, shape index: {}]   ;;  %s6222_s7 = inlined_call_operand.hbm [shape: bf16[512,512], index: 7, kind: input, shape index: {}]   ;;  %s6223_s8 = inlined_call_operand.vmem [shape: f32[1,512], index: 8, kind: input, shape index: {}]   ;;  %s6224_s9 = inlined_call_operand.hbm [shape: bf16[512,128], index: 9, kind: input, shape index: {}]   ;;  %s6225_s10 = inlined_call_operand.vmem [shape: f32[1,128], index: 10, kind: input, shape index: {}]   ;;  %s6226_s11 = inlined_call_operand.vmem [shape: f32[16,128], index: 11, kind: output, shape index: {}]  }
   0x1   :  { %17 = vsyncpa [#allocation5], 0 }
   0x2   :  { %18 = vsyncpa [#allocation8], 0  ;;  %s5983_s17 = smov [#allocation4]   ;;  %s5984_s19 = smov [#allocation7]  }
   0x3   :  { %s42_s18 = sshll.u32 %s5983_s17, 4  ;;  %s68_s20 = sshll.u32 %s5984_s19, 4  ;;  %s43_s18 = int_to_ptr.vmem [resolvable:$true] %s42_s18  ;;  %s6052_s20 = int_to_ptr.vmem [resolvable:$true] %s68_s20 }
   0x4   :  { %s5867_s23 = scalar_lea.hbm %s6219_s4, 16384 }
   0x5   :  { %p5868_p0 = scmp.ne.s32.totalorder %s6219_s4, %s5867_s23  ;;  %p5871_p1 = scmp.lt.u32.totalorder %s5867_s23, %s6219_s4 }
   0x7   :  { %p5873_p2 = pnand %p5871_p1, %p5868_p0 }
   0x9   :  { %5876 = shalt.err (!%p5873_p2)
}
   0xa   :  { %s5877_s28 = scalar_lea.vmem %s43_s18, 16384  ;;  %p5882_p4 = scmp.lt.s32.totalorder %s43_s18, %s43_s18 }
   0xb   :  { %p5878_p3 = scmp.ne.s32.totalorder %s43_s18, %s5877_s28  ;;  %p5883_p5 = scmp.lt.s32.totalorder %s5877_s28, %s5877_s28 }
   0xd   :  { %p5884_p6 = por %p5883_p5, %p5882_p4 }
   0xf   :  { %p5885_p7 = pnand %p5884_p6, %p5878_p3 }
  0x11   :  { %5888 = shalt.err (!%p5885_p7)
}
  0x12   :  { %s5985_s29 = smov 256   ;;  %s5986_s30 = smov 16  }
  0x13   :  { %48 = dma.hbm_to_vmem [thread:$0]  %s6219_s4, 16384, %s43_s18, [#allocation5], %s5985_s29, %s5985_s29, %s5986_s30  }
  0x14   :  { %s5889_s16 = scalar_lea.hbm %s6222_s7, 16384 }
  0x15   :  { %p5890_p8 = scmp.ne.s32.totalorder %s6222_s7, %s5889_s16  ;;  %p5893_p9 = scmp.lt.u32.totalorder %s5889_s16, %s6222_s7 }
  0x17   :  { %p5895_p10 = pnand %p5893_p9, %p5890_p8 }
  0x19   :  { %5898 = shalt.err (!%p5895_p10)
}
  0x1a   :  { %s5899_s23 = scalar_lea.vmem %s6052_s20, 16384  ;;  %p5904_p12 = scmp.lt.s32.totalorder %s6052_s20, %s6052_s20 }
  0x1b   :  { %p5900_p11 = scmp.ne.s32.totalorder %s6052_s20, %s5899_s23  ;;  %p5905_p13 = scmp.lt.s32.totalorder %s5899_s23, %s5899_s23 }
  0x1d   :  { %p5906_p0 = por %p5905_p13, %p5904_p12 }
  0x1f   :  { %p5907_p1 = pnand %p5906_p0, %p5900_p11 }
  0x21   :  { %5910 = shalt.err (!%p5907_p1)
}
  0x22   :  { %74 = dma.hbm_to_vmem [thread:$0]  %s6222_s7, 16384, %s6052_s20, [#allocation8], %s5985_s29, %s5985_s29, %s5986_s30  }
  0x23   :  { %s5987_s24 = smov [#allocation2]   ;;  %s5988_s26 = smov [#allocation6]  }
  0x24   :  { %s30_s25 = sshll.u32 %s5987_s24, 4  ;;  %s54_s27 = sshll.u32 %s5988_s26, 4  ;;  %s31_s25 = int_to_ptr.vmem [resolvable:$true] %s30_s25  ;;  %s6089_s27 = int_to_ptr.vmem [resolvable:$true] %s54_s27 }
  0x25   :  { %s5911_s13 = scalar_lea.hbm %s6218_s3, 16384 }
  0x26   :  { %p5912_p2 = scmp.ne.s32.totalorder %s6218_s3, %s5911_s13  ;;  %p5915_p3 = scmp.lt.u32.totalorder %s5911_s13, %s6218_s3 }
  0x28   :  { %p5917_p4 = pnand %p5915_p3, %p5912_p2 }
  0x2a   :  { %5920 = shalt.err (!%p5917_p4)
}
  0x2b   :  { %s5921_s7 = scalar_lea.vmem %s31_s25, 16384  ;;  %p5926_p6 = scmp.lt.s32.totalorder %s31_s25, %s31_s25 }
  0x2c   :  { %p5922_p5 = scmp.ne.s32.totalorder %s31_s25, %s5921_s7  ;;  %p5927_p7 = scmp.lt.s32.totalorder %s5921_s7, %s5921_s7 }
  0x2e   :  { %p5928_p8 = por %p5927_p7, %p5926_p6 }
  0x30   :  { %p5929_p9 = pnand %p5928_p8, %p5922_p5 }
  0x32   :  { %5932 = shalt.err (!%p5929_p9)
}
  0x33   :  { %36 = dma.hbm_to_vmem [thread:$0]  %s6218_s3, 16384, %s31_s25, [#allocation3], %s5985_s29, %s5985_s29, %s5986_s30  }
  0x34   :  { %s5933_s23 = scalar_lea.hbm %s6220_s5, 16384 }
  0x35   :  { %p5934_p10 = scmp.ne.s32.totalorder %s6220_s5, %s5933_s23  ;;  %p5937_p11 = scmp.lt.u32.totalorder %s5933_s23, %s6220_s5 }
  0x37   :  { %p5939_p12 = pnand %p5937_p11, %p5934_p10 }
  0x39   :  { %5942 = shalt.err (!%p5939_p12)
}
  0x3a   :  { %s5943_s28 = scalar_lea.vmem %s6089_s27, 16384  ;;  %p5948_p0 = scmp.lt.s32.totalorder %s6089_s27, %s6089_s27 }
  0x3b   :  { %p5944_p13 = scmp.ne.s32.totalorder %s6089_s27, %s5943_s28  ;;  %p5949_p1 = scmp.lt.s32.totalorder %s5943_s28, %s5943_s28 }
  0x3d   :  { %p5950_p2 = por %p5949_p1, %p5948_p0 }
  0x3f   :  { %p5951_p3 = pnand %p5950_p2, %p5944_p13 }
  0x41   :  { %5954 = shalt.err (!%p5951_p3)
}
  0x42   :  { %60 = dma.hbm_to_vmem [thread:$0]  %s6220_s5, 16384, %s6089_s27, [#allocation5], %s5985_s29, %s5985_s29, %s5986_s30  }
  0x43   :  { %s5989_s12 = smov [#allocation9]   ;;  %s5955_s16 = scalar_lea.hbm %s6224_s9, 4096 }
  0x44   :  { %s82_s13 = sshll.u32 %s5989_s12, 4  ;;  %p5956_p4 = scmp.ne.s32.totalorder %s6224_s9, %s5955_s16  ;;  %s83_s13 = int_to_ptr.vmem [resolvable:$true] %s82_s13 }
  0x45   :  { %p5959_p5 = scmp.lt.u32.totalorder %s5955_s16, %s6224_s9 }
  0x47   :  { %p5961_p6 = pnand %p5959_p5, %p5956_p4 }
  0x49   :  { %5964 = shalt.err (!%p5961_p6)
}
  0x4a   :  { %s5965_s21 = scalar_lea.vmem %s83_s13, 4096  ;;  %p5970_p8 = scmp.lt.s32.totalorder %s83_s13, %s83_s13 }
  0x4b   :  { %p5966_p7 = scmp.ne.s32.totalorder %s83_s13, %s5965_s21  ;;  %p5971_p9 = scmp.lt.s32.totalorder %s5965_s21, %s5965_s21 }
  0x4d   :  { %p5972_p10 = por %p5971_p9, %p5970_p8 }
  0x4f   :  { %p5973_p11 = pnand %p5972_p10, %p5966_p7 }
  0x51   :  { %5976 = shalt.err (!%p5973_p11)
}
  0x52   :  { %s5990_s5 = smov 64   ;;  %s5991_s29 = smov 4  }
  0x53   :  { %88 = dma.hbm_to_vmem [thread:$0]  %s6224_s9, 4096, %s83_s13, [#allocation8], %s5990_s5, %s5990_s5, %s5991_s29  }
  0x54   :  { %5977 = dma.done.wait [#allocation3], 16384  }
  0x55   :  { %5978 = vsyncadd [#allocation3], 4294950912 }
  0x56   :  { %5979 = dma.done.wait [#allocation5], 32768  }
  0x57   :  { %5980 = vsyncadd [#allocation5], 4294934528 }
  0x58   :  { %5981 = dma.done.wait [#allocation8], 20480  }
  0x59   :  { %5982 = vsyncadd [#allocation8], 4294946816  ;;  %v5045_v0 = vld [vmem:[#allocation4 + $0x4] ss:$16 sps:$4 sm:$0xff]   ;;  %v5047_v1 = vld [vmem:[#allocation4 + $0xc] ss:$16 sps:$4 sm:$0xff]  }
  0x5a   :  { %1031 = vmatprep.subr.bf16.mxu0 %v5045_v0  ;;  %v5049_v2 = vld [vmem:[#allocation4] ss:$16 sps:$4 sm:$0xff]   ;;  %v5050_v3 = vld [vmem:[#allocation4 + $0x8] ss:$16 sps:$4 sm:$0xff]   ;;  %1117 = vmatprep.subr.bf16.mxu1 %v5047_v1  ;;  %v5051_v4 = vld [vmem:[#allocation4 + $0x24] ss:$16 sps:$4 sm:$0xff]  }
  0x5b   :  { %1032 = vmatpush1.bf16.msra.mxu0 %v5049_v2  ;;  %1118 = vmatpush1.bf16.msra.mxu1 %v5050_v3  ;;  %v5053_v5 = vld [vmem:[#allocation4 + $0x2c] ss:$16 sps:$4 sm:$0xff]   ;;  %v5055_v6 = vld [vmem:[#allocation4 + $0x20] ss:$16 sps:$4 sm:$0xff]   ;;  %v5056_v7 = vld [vmem:[#allocation4 + $0x28] ss:$16 sps:$4 sm:$0xff]  }
  0x5c   :  { %1033 = vmatprep.subr.bf16.mxu0 %v5051_v4  ;;  %1119 = vmatprep.subr.bf16.mxu1 %v5053_v5  ;;  %v5057_v8 = vld [vmem:[#allocation4 + $0x44] ss:$16 sps:$4 sm:$0xff]   ;;  %v5059_v9 = vld [vmem:[#allocation4 + $0x4c] ss:$16 sps:$4 sm:$0xff]   ;;  %v5061_v10 = vld [vmem:[#allocation4 + $0x40] ss:$16 sps:$4 sm:$0xff]  }
  0x5d   :  { %v5062_v11 = vld [vmem:[#allocation4 + $0x48] ss:$16 sps:$4 sm:$0xff]   ;;  %v5063_v12 = vld [vmem:[#allocation4 + $0x64] ss:$16 sps:$4 sm:$0xff]   ;;  %v5065_v13 = vld [vmem:[#allocation4 + $0x6c] ss:$16 sps:$4 sm:$0xff]  }
  0x5e   :  { %v5067_v14 = vld [vmem:[#allocation4 + $0x60] ss:$16 sps:$4 sm:$0xff]   ;;  %v5068_v15 = vld [vmem:[#allocation4 + $0x68] ss:$16 sps:$4 sm:$0xff]   ;;  %v5069_v16 = vld [vmem:[#allocation4 + $0x84] ss:$16 sps:$4 sm:$0xff]  }
  0x5f   :  { %1034 = vmatpush1.bf16.msra.mxu0 %v5055_v6  ;;  %1120 = vmatpush1.bf16.msra.mxu1 %v5056_v7  ;;  %v5071_v17 = vld [vmem:[#allocation4 + $0x8c] ss:$16 sps:$4 sm:$0xff]   ;;  %v5073_v18 = vld [vmem:[#allocation4 + $0x80] ss:$16 sps:$4 sm:$0xff]   ;;  %v5074_v19 = vld [vmem:[#allocation4 + $0x88] ss:$16 sps:$4 sm:$0xff]  }
  0x60   :  { %1035 = vmatprep.subr.bf16.mxu0 %v5057_v8  ;;  %1121 = vmatprep.subr.bf16.mxu1 %v5059_v9  ;;  %v5075_v20 = vld [vmem:[#allocation4 + $0xa4] ss:$16 sps:$4 sm:$0xff]   ;;  %v5077_v21 = vld [vmem:[#allocation4 + $0xac] ss:$16 sps:$4 sm:$0xff]   ;;  %v5079_v22 = vld [vmem:[#allocation4 + $0xa0] ss:$16 sps:$4 sm:$0xff]  }
  0x61   :  { %v5080_v23 = vld [vmem:[#allocation4 + $0xa8] ss:$16 sps:$4 sm:$0xff]   ;;  %v5081_v24 = vld [vmem:[#allocation4 + $0xc4] ss:$16 sps:$4 sm:$0xff]   ;;  %v5083_v25 = vld [vmem:[#allocation4 + $0xcc] ss:$16 sps:$4 sm:$0xff]  }
  0x62   :  { %v5085_v26 = vld [vmem:[#allocation4 + $0xc0] ss:$16 sps:$4 sm:$0xff]   ;;  %v5086_v27 = vld [vmem:[#allocation4 + $0xc8] ss:$16 sps:$4 sm:$0xff]   ;;  %v5087_v28 = vld [vmem:[#allocation4 + $0xe4] ss:$16 sps:$4 sm:$0xff]  }
  0x63   :  { %1036 = vmatpush1.bf16.msra.mxu0 %v5061_v10  ;;  %1122 = vmatpush1.bf16.msra.mxu1 %v5062_v11  ;;  %v5089_v29 = vld [vmem:[#allocation4 + $0xec] ss:$16 sps:$4 sm:$0xff]   ;;  %v5091_v30 = vld [vmem:[#allocation4 + $0xe0] ss:$16 sps:$4 sm:$0xff]   ;;  %v5092_v31 = vld [vmem:[#allocation4 + $0xe8] ss:$16 sps:$4 sm:$0xff]  }
  0x64   :  { %1037 = vmatprep.subr.bf16.mxu0 %v5063_v12  ;;  %1123 = vmatprep.subr.bf16.mxu1 %v5065_v13  ;;  %v5093_v32 = vld [vmem:[#allocation4 + $0x104] ss:$16 sps:$4 sm:$0xff]   ;;  %v5095_v33 = vld [vmem:[#allocation4 + $0x10c] ss:$16 sps:$4 sm:$0xff]   ;;  %v5097_v34 = vld [vmem:[#allocation4 + $0x100] ss:$16 sps:$4 sm:$0xff]  }
  0x65   :  { %v5098_v35 = vld [vmem:[#allocation4 + $0x108] ss:$16 sps:$4 sm:$0xff]   ;;  %v5099_v36 = vld [vmem:[#allocation4 + $0x124] ss:$16 sps:$4 sm:$0xff]   ;;  %v5101_v37 = vld [vmem:[#allocation4 + $0x12c] ss:$16 sps:$4 sm:$0xff]  }
  0x66   :  { %v5103_v38 = vld [vmem:[#allocation4 + $0x120] ss:$16 sps:$4 sm:$0xff]   ;;  %v5104_v39 = vld [vmem:[#allocation4 + $0x128] ss:$16 sps:$4 sm:$0xff]   ;;  %v5105_v40 = vld [vmem:[#allocation4 + $0x144] ss:$16 sps:$4 sm:$0xff]  }
  0x67   :  { %1038 = vmatpush1.bf16.msra.mxu0 %v5067_v14  ;;  %1124 = vmatpush1.bf16.msra.mxu1 %v5068_v15  ;;  %v5107_v41 = vld [vmem:[#allocation4 + $0x14c] ss:$16 sps:$4 sm:$0xff]   ;;  %v5109_v42 = vld [vmem:[#allocation4 + $0x140] ss:$16 sps:$4 sm:$0xff]   ;;  %v5110_v43 = vld [vmem:[#allocation4 + $0x148] ss:$16 sps:$4 sm:$0xff]  }
  0x68   :  { %1039 = vmatprep.subr.bf16.mxu0 %v5069_v16  ;;  %1125 = vmatprep.subr.bf16.mxu1 %v5071_v17  ;;  %v5111_v44 = vld [vmem:[#allocation4 + $0x164] ss:$16 sps:$4 sm:$0xff]   ;;  %v5113_v45 = vld [vmem:[#allocation4 + $0x16c] ss:$16 sps:$4 sm:$0xff]   ;;  %v5115_v46 = vld [vmem:[#allocation4 + $0x160] ss:$16 sps:$4 sm:$0xff]  }
  0x69   :  { %v5116_v47 = vld [vmem:[#allocation4 + $0x168] ss:$16 sps:$4 sm:$0xff]   ;;  %v5143_v48 = vld [vmem:[%s6216_s1 + $0x4] ss:$16 sps:$4 sm:$0xff]   ;;  %v5117_v49 = vld [vmem:[#allocation4 + $0x184] ss:$16 sps:$4 sm:$0xff]  }
  0x6a   :  { %v5119_v50 = vld [vmem:[#allocation4 + $0x18c] ss:$16 sps:$4 sm:$0xff]   ;;  %1063 = vmatprep.mubr.bf16.mxu0 %v5143_v48  ;;  %1149 = vmatprep.mubr.bf16.mxu1 %v5143_v48  ;;  %v5121_v51 = vld [vmem:[#allocation4 + $0x180] ss:$16 sps:$4 sm:$0xff]   ;;  %v5122_v52 = vld [vmem:[#allocation4 + $0x188] ss:$16 sps:$4 sm:$0xff]  }
  0x6b   :  { %1040 = vmatpush1.bf16.msra.mxu0 %v5073_v18  ;;  %1126 = vmatpush1.bf16.msra.mxu1 %v5074_v19  ;;  %v5123_v53 = vld [vmem:[#allocation4 + $0x1a4] ss:$16 sps:$4 sm:$0xff]   ;;  %v5125_v54 = vld [vmem:[#allocation4 + $0x1ac] ss:$16 sps:$4 sm:$0xff]   ;;  %v5127_v55 = vld [vmem:[#allocation4 + $0x1a0] ss:$16 sps:$4 sm:$0xff]  }
  0x6c   :  { %1041 = vmatprep.subr.bf16.mxu0 %v5075_v20  ;;  %1127 = vmatprep.subr.bf16.mxu1 %v5077_v21  ;;  %v5128_v56 = vld [vmem:[#allocation4 + $0x1a8] ss:$16 sps:$4 sm:$0xff]   ;;  %v5129_v57 = vld [vmem:[#allocation4 + $0x1c4] ss:$16 sps:$4 sm:$0xff]   ;;  %v5131_v58 = vld [vmem:[#allocation4 + $0x1cc] ss:$16 sps:$4 sm:$0xff]  }
  0x6d   :  { %v5133_v59 = vld [vmem:[#allocation4 + $0x1c0] ss:$16 sps:$4 sm:$0xff]   ;;  %v5134_v60 = vld [vmem:[#allocation4 + $0x1c8] ss:$16 sps:$4 sm:$0xff]   ;;  %v5135_v61 = vld [vmem:[#allocation4 + $0x1e4] ss:$16 sps:$4 sm:$0xff]  }
  0x6e   :  { %v5137_v62 = vld [vmem:[#allocation4 + $0x1ec] ss:$16 sps:$4 sm:$0xff]   ;;  %v5139_v63 = vld [vmem:[#allocation4 + $0x1e0] ss:$16 sps:$4 sm:$0xff]   ;;  %v5140_v0 = vld [vmem:[#allocation4 + $0x1e8] ss:$16 sps:$4 sm:$0xff]  }
  0x6f   :  { %1042 = vmatpush1.bf16.msra.mxu0 %v5079_v22  ;;  %1128 = vmatpush1.bf16.msra.mxu1 %v5080_v23  ;;  %v5146_v1 = vld [vmem:[#allocation4 + $0x204] ss:$16 sps:$4 sm:$0xff]   ;;  %v5149_v2 = vld [vmem:[#allocation4 + $0x20c] ss:$16 sps:$4 sm:$0xff]   ;;  %v5141_v3 = vld [vmem:[%s6216_s1] ss:$16 sps:$4 sm:$0xff]  }
  0x70   :  { %1043 = vmatprep.subr.bf16.mxu0 %v5081_v24  ;;  %1129 = vmatprep.subr.bf16.mxu1 %v5083_v25  ;;  %v5144_v4 = vld [vmem:[#allocation4 + $0x200] ss:$16 sps:$4 sm:$0xff]   ;;  %v5147_v5 = vld [vmem:[#allocation4 + $0x208] ss:$16 sps:$4 sm:$0xff]   ;;  %v5152_v6 = vld [vmem:[#allocation4 + $0x224] ss:$16 sps:$4 sm:$0xff]  }
  0x71   :  { %v5155_v7 = vld [vmem:[#allocation4 + $0x22c] ss:$16 sps:$4 sm:$0xff]   ;;  %v5150_v8 = vld [vmem:[#allocation4 + $0x220] ss:$16 sps:$4 sm:$0xff]   ;;  %v5153_v9 = vld [vmem:[#allocation4 + $0x228] ss:$16 sps:$4 sm:$0xff]  }
  0x72   :  { %v5158_v10 = vld [vmem:[#allocation4 + $0x244] ss:$16 sps:$4 sm:$0xff]   ;;  %v5161_v11 = vld [vmem:[#allocation4 + $0x24c] ss:$16 sps:$4 sm:$0xff]   ;;  %v5156_v12 = vld [vmem:[#allocation4 + $0x240] ss:$16 sps:$4 sm:$0xff]  }
  0x73   :  { %1044 = vmatpush1.bf16.msra.mxu0 %v5085_v26  ;;  %1130 = vmatpush1.bf16.msra.mxu1 %v5086_v27  ;;  %v5159_v13 = vld [vmem:[#allocation4 + $0x248] ss:$16 sps:$4 sm:$0xff]   ;;  %v5164_v14 = vld [vmem:[#allocation4 + $0x264] ss:$16 sps:$4 sm:$0xff]   ;;  %v5167_v15 = vld [vmem:[#allocation4 + $0x26c] ss:$16 sps:$4 sm:$0xff]  }
  0x74   :  { %1045 = vmatprep.subr.bf16.mxu0 %v5087_v28  ;;  %1131 = vmatprep.subr.bf16.mxu1 %v5089_v29  ;;  %v5162_v16 = vld [vmem:[#allocation4 + $0x260] ss:$16 sps:$4 sm:$0xff]   ;;  %v5165_v17 = vld [vmem:[#allocation4 + $0x268] ss:$16 sps:$4 sm:$0xff]   ;;  %v5170_v18 = vld [vmem:[#allocation4 + $0x284] ss:$16 sps:$4 sm:$0xff]  }
  0x75   :  { %v5173_v19 = vld [vmem:[#allocation4 + $0x28c] ss:$16 sps:$4 sm:$0xff]   ;;  %v5168_v20 = vld [vmem:[#allocation4 + $0x280] ss:$16 sps:$4 sm:$0xff]   ;;  %v5171_v21 = vld [vmem:[#allocation4 + $0x288] ss:$16 sps:$4 sm:$0xff]  }
  0x76   :  { %v5176_v22 = vld [vmem:[#allocation4 + $0x2a4] ss:$16 sps:$4 sm:$0xff]   ;;  %v5179_v23 = vld [vmem:[#allocation4 + $0x2ac] ss:$16 sps:$4 sm:$0xff]   ;;  %v5174_v24 = vld [vmem:[#allocation4 + $0x2a0] ss:$16 sps:$4 sm:$0xff]  }
  0x77   :  { %1046 = vmatpush1.bf16.msra.mxu0 %v5091_v30  ;;  %1132 = vmatpush1.bf16.msra.mxu1 %v5092_v31  ;;  %v5177_v25 = vld [vmem:[#allocation4 + $0x2a8] ss:$16 sps:$4 sm:$0xff]   ;;  %v5182_v26 = vld [vmem:[#allocation4 + $0x2c4] ss:$16 sps:$4 sm:$0xff]   ;;  %v5185_v27 = vld [vmem:[#allocation4 + $0x2cc] ss:$16 sps:$4 sm:$0xff]  }
  0x78   :  { %1047 = vmatprep.subr.bf16.mxu0 %v5093_v32  ;;  %1133 = vmatprep.subr.bf16.mxu1 %v5095_v33  ;;  %v5180_v28 = vld [vmem:[#allocation4 + $0x2c0] ss:$16 sps:$4 sm:$0xff]   ;;  %v5183_v29 = vld [vmem:[#allocation4 + $0x2c8] ss:$16 sps:$4 sm:$0xff]   ;;  %v5242_v30 = vld [vmem:[%s6216_s1 + $0xc] ss:$16 sps:$4 sm:$0xff]  }
  0x79   :  { %v5188_v31 = vld [vmem:[#allocation4 + $0x2e4] ss:$16 sps:$4 sm:$0xff]   ;;  %v5191_v32 = vld [vmem:[#allocation4 + $0x2ec] ss:$16 sps:$4 sm:$0xff]   ;;  %v5186_v33 = vld [vmem:[#allocation4 + $0x2e0] ss:$16 sps:$4 sm:$0xff]  }
  0x7a   :  { %v5215_v48 = vld [vmem:[#allocation4 + $0x36c] ss:$16 sps:$4 sm:$0xff]  }
  0x7b   :  { %1048 = vmatpush1.bf16.msra.mxu0 %v5097_v34  ;;  %1134 = vmatpush1.bf16.msra.mxu1 %v5098_v35  ;;  %v5189_v34 = vld [vmem:[#allocation4 + $0x2e8] ss:$16 sps:$4 sm:$0xff]   ;;  %v5194_v35 = vld [vmem:[#allocation4 + $0x304] ss:$16 sps:$4 sm:$0xff]  }
  0x7c   :  { %1049 = vmatprep.subr.bf16.mxu0 %v5099_v36  ;;  %1135 = vmatprep.subr.bf16.mxu1 %v5101_v37  ;;  %v5197_v36 = vld [vmem:[#allocation4 + $0x30c] ss:$16 sps:$4 sm:$0xff]   ;;  %v5192_v37 = vld [vmem:[#allocation4 + $0x300] ss:$16 sps:$4 sm:$0xff]  }
  0x7f   :  { %1050 = vmatpush1.bf16.msra.mxu0 %v5103_v38  ;;  %1136 = vmatpush1.bf16.msra.mxu1 %v5104_v39  ;;  %v5195_v38 = vld [vmem:[#allocation4 + $0x308] ss:$16 sps:$4 sm:$0xff]   ;;  %v5200_v39 = vld [vmem:[#allocation4 + $0x324] ss:$16 sps:$4 sm:$0xff]  }
  0x80   :  { %1051 = vmatprep.subr.bf16.mxu0 %v5105_v40  ;;  %1137 = vmatprep.subr.bf16.mxu1 %v5107_v41  ;;  %v5203_v40 = vld [vmem:[#allocation4 + $0x32c] ss:$16 sps:$4 sm:$0xff]   ;;  %v5198_v41 = vld [vmem:[#allocation4 + $0x320] ss:$16 sps:$4 sm:$0xff]  }
  0x83   :  { %1052 = vmatpush1.bf16.msra.mxu0 %v5109_v42  ;;  %1138 = vmatpush1.bf16.msra.mxu1 %v5110_v43  ;;  %v5201_v42 = vld [vmem:[#allocation4 + $0x328] ss:$16 sps:$4 sm:$0xff]   ;;  %v5206_v43 = vld [vmem:[#allocation4 + $0x344] ss:$16 sps:$4 sm:$0xff]  }
  0x84   :  { %1053 = vmatprep.subr.bf16.mxu0 %v5111_v44  ;;  %1139 = vmatprep.subr.bf16.mxu1 %v5113_v45  ;;  %v5209_v44 = vld [vmem:[#allocation4 + $0x34c] ss:$16 sps:$4 sm:$0xff]   ;;  %v5204_v45 = vld [vmem:[#allocation4 + $0x340] ss:$16 sps:$4 sm:$0xff]  }
  0x87   :  { %1054 = vmatpush1.bf16.msra.mxu0 %v5115_v46  ;;  %1140 = vmatpush1.bf16.msra.mxu1 %v5116_v47  ;;  %v5207_v46 = vld [vmem:[#allocation4 + $0x348] ss:$16 sps:$4 sm:$0xff]   ;;  %v5212_v47 = vld [vmem:[#allocation4 + $0x364] ss:$16 sps:$4 sm:$0xff]  }
  0x88   :  { %1055 = vmatprep.subr.bf16.mxu0 %v5117_v49  ;;  %1141 = vmatprep.subr.bf16.mxu1 %v5119_v50  ;;  %v5210_v49 = vld [vmem:[#allocation4 + $0x360] ss:$16 sps:$4 sm:$0xff]   ;;  %v5213_v50 = vld [vmem:[#allocation4 + $0x368] ss:$16 sps:$4 sm:$0xff]  }
  0x8b   :  { %1056 = vmatpush1.bf16.msra.mxu0 %v5121_v51  ;;  %1142 = vmatpush1.bf16.msra.mxu1 %v5122_v52  ;;  %v5218_v51 = vld [vmem:[#allocation4 + $0x384] ss:$16 sps:$4 sm:$0xff]   ;;  %v5221_v52 = vld [vmem:[#allocation4 + $0x38c] ss:$16 sps:$4 sm:$0xff]  }
  0x8c   :  { %1057 = vmatprep.subr.bf16.mxu0 %v5123_v53  ;;  %1143 = vmatprep.subr.bf16.mxu1 %v5125_v54  ;;  %v5216_v53 = vld [vmem:[#allocation4 + $0x380] ss:$16 sps:$4 sm:$0xff]   ;;  %v5219_v54 = vld [vmem:[#allocation4 + $0x388] ss:$16 sps:$4 sm:$0xff]  }
  0x8f   :  { %1058 = vmatpush1.bf16.msra.mxu0 %v5127_v55  ;;  %1144 = vmatpush1.bf16.msra.mxu1 %v5128_v56  ;;  %v5224_v55 = vld [vmem:[#allocation4 + $0x3a4] ss:$16 sps:$4 sm:$0xff]   ;;  %v5227_v56 = vld [vmem:[#allocation4 + $0x3ac] ss:$16 sps:$4 sm:$0xff]  }
  0x90   :  { %1059 = vmatprep.subr.bf16.mxu0 %v5129_v57  ;;  %1145 = vmatprep.subr.bf16.mxu1 %v5131_v58  ;;  %v5222_v57 = vld [vmem:[#allocation4 + $0x3a0] ss:$16 sps:$4 sm:$0xff]   ;;  %v5225_v58 = vld [vmem:[#allocation4 + $0x3a8] ss:$16 sps:$4 sm:$0xff]  }
  0x93   :  { %1060 = vmatpush1.bf16.msra.mxu0 %v5133_v59  ;;  %1146 = vmatpush1.bf16.msra.mxu1 %v5134_v60  ;;  %v5230_v59 = vld [vmem:[#allocation4 + $0x3c4] ss:$16 sps:$4 sm:$0xff]   ;;  %v5233_v60 = vld [vmem:[#allocation4 + $0x3cc] ss:$16 sps:$4 sm:$0xff]  }
  0x94   :  { %1061 = vmatprep.subr.bf16.mxu0 %v5135_v61  ;;  %1147 = vmatprep.subr.bf16.mxu1 %v5137_v62  ;;  %v5228_v61 = vld [vmem:[#allocation4 + $0x3c0] ss:$16 sps:$4 sm:$0xff]   ;;  %v5231_v62 = vld [vmem:[#allocation4 + $0x3c8] ss:$16 sps:$4 sm:$0xff]  }
  0x97   :  { %1062 = vmatpush1.bf16.msra.mxu0 %v5139_v63  ;;  %1148 = vmatpush1.bf16.msra.mxu1 %v5140_v0  ;;  %v5236_v63 = vld [vmem:[#allocation4 + $0x3e4] ss:$16 sps:$4 sm:$0xff]   ;;  %v5239_v0 = vld [vmem:[#allocation4 + $0x3ec] ss:$16 sps:$4 sm:$0xff]  }
  0x98   :  { %1074 = vmatprep.subr.bf16.mxu0 %v5146_v1  ;;  %1160 = vmatprep.subr.bf16.mxu1 %v5149_v2  ;;  %v5234_v1 = vld [vmem:[#allocation4 + $0x3e0] ss:$16 sps:$4 sm:$0xff]   ;;  %v5237_v2 = vld [vmem:[#allocation4 + $0x3e8] ss:$16 sps:$4 sm:$0xff]  }
  0x9a   :  { %1064 = vmatmul.mubr.bf16.vlgmr.msra.gmra.mrb[0].mxu0 %v5141_v3  ;;  %1150 = vmatmul.mubr.bf16.vlgmr.msra.gmra.mrb[0].mxu1 %v5141_v3  ;;  %v5245_v3 = vld [vmem:[#allocation2 + $0x4] ss:$16 sps:$4 sm:$0xff]  }
  0x9b   :  { %1075 = vmatpush1.bf16.msra.mxu0 %v5144_v4  ;;  %1161 = vmatpush1.bf16.msra.mxu1 %v5147_v5  ;;  %v5248_v4 = vld [vmem:[#allocation2 + $0xc] ss:$16 sps:$4 sm:$0xff]   ;;  %v5240_v5 = vld [vmem:[%s6216_s1 + $0x8] ss:$16 sps:$4 sm:$0xff]  }
  0x9c   :  { %1076 = vmatprep.subr.bf16.mxu0 %v5152_v6  ;;  %1162 = vmatprep.subr.bf16.mxu1 %v5155_v7  ;;  %v5243_v6 = vld [vmem:[#allocation2] ss:$16 sps:$4 sm:$0xff]   ;;  %v5246_v7 = vld [vmem:[#allocation2 + $0x8] ss:$16 sps:$4 sm:$0xff]  }
  0x9d   :  { %1106 = vmatprep.mubr.bf16.mxu0 %v5242_v30  ;;  %1192 = vmatprep.mubr.bf16.mxu1 %v5242_v30  ;;  %v5284_v30 = vld [vmem:[#allocation2 + $0xcc] ss:$16 sps:$4 sm:$0xff]  }
  0x9f   :  { %1077 = vmatpush1.bf16.msra.mxu0 %v5150_v8  ;;  %1163 = vmatpush1.bf16.msra.mxu1 %v5153_v9  ;;  %v5251_v8 = vld [vmem:[#allocation2 + $0x24] ss:$16 sps:$4 sm:$0xff]   ;;  %v5254_v9 = vld [vmem:[#allocation2 + $0x2c] ss:$16 sps:$4 sm:$0xff]  }
  0xa0   :  { %1078 = vmatprep.subr.bf16.mxu0 %v5158_v10  ;;  %1164 = vmatprep.subr.bf16.mxu1 %v5161_v11  ;;  %v5249_v10 = vld [vmem:[#allocation2 + $0x20] ss:$16 sps:$4 sm:$0xff]   ;;  %v5252_v11 = vld [vmem:[#allocation2 + $0x28] ss:$16 sps:$4 sm:$0xff]  }
  0xa3   :  { %1079 = vmatpush1.bf16.msra.mxu0 %v5156_v12  ;;  %1165 = vmatpush1.bf16.msra.mxu1 %v5159_v13  ;;  %v5341_v12 = vld [vmem:[%s6215_s0 + $0x4] ss:$16 sps:$4 sm:$0xff]   ;;  %v5257_v13 = vld [vmem:[#allocation2 + $0x44] ss:$16 sps:$4 sm:$0xff]  }
  0xa4   :  { %1080 = vmatprep.subr.bf16.mxu0 %v5164_v14  ;;  %1166 = vmatprep.subr.bf16.mxu1 %v5167_v15  ;;  %v5260_v14 = vld [vmem:[#allocation2 + $0x4c] ss:$16 sps:$4 sm:$0xff]   ;;  %v5255_v15 = vld [vmem:[#allocation2 + $0x40] ss:$16 sps:$4 sm:$0xff]  }
  0xa7   :  { %1081 = vmatpush1.bf16.msra.mxu0 %v5162_v16  ;;  %1167 = vmatpush1.bf16.msra.mxu1 %v5165_v17  ;;  %v5258_v16 = vld [vmem:[#allocation2 + $0x48] ss:$16 sps:$4 sm:$0xff]   ;;  %v5263_v17 = vld [vmem:[#allocation2 + $0x64] ss:$16 sps:$4 sm:$0xff]  }
  0xa8   :  { %1082 = vmatprep.subr.bf16.mxu0 %v5170_v18  ;;  %1168 = vmatprep.subr.bf16.mxu1 %v5173_v19  ;;  %v5266_v18 = vld [vmem:[#allocation2 + $0x6c] ss:$16 sps:$4 sm:$0xff]   ;;  %v5261_v19 = vld [vmem:[#allocation2 + $0x60] ss:$16 sps:$4 sm:$0xff]  }
  0xab   :  { %1083 = vmatpush1.bf16.msra.mxu0 %v5168_v20  ;;  %1169 = vmatpush1.bf16.msra.mxu1 %v5171_v21  ;;  %v5264_v20 = vld [vmem:[#allocation2 + $0x68] ss:$16 sps:$4 sm:$0xff]   ;;  %v5269_v21 = vld [vmem:[#allocation2 + $0x84] ss:$16 sps:$4 sm:$0xff]  }
  0xac   :  { %1084 = vmatprep.subr.bf16.mxu0 %v5176_v22  ;;  %1170 = vmatprep.subr.bf16.mxu1 %v5179_v23  ;;  %v5272_v22 = vld [vmem:[#allocation2 + $0x8c] ss:$16 sps:$4 sm:$0xff]   ;;  %v5267_v23 = vld [vmem:[#allocation2 + $0x80] ss:$16 sps:$4 sm:$0xff]  }
  0xaf   :  { %1085 = vmatpush1.bf16.msra.mxu0 %v5174_v24  ;;  %1171 = vmatpush1.bf16.msra.mxu1 %v5177_v25  ;;  %v5270_v24 = vld [vmem:[#allocation2 + $0x88] ss:$16 sps:$4 sm:$0xff]   ;;  %v5275_v25 = vld [vmem:[#allocation2 + $0xa4] ss:$16 sps:$4 sm:$0xff]  }
  0xb0   :  { %1086 = vmatprep.subr.bf16.mxu0 %v5182_v26  ;;  %1172 = vmatprep.subr.bf16.mxu1 %v5185_v27  ;;  %v5278_v26 = vld [vmem:[#allocation2 + $0xac] ss:$16 sps:$4 sm:$0xff]   ;;  %v5273_v27 = vld [vmem:[#allocation2 + $0xa0] ss:$16 sps:$4 sm:$0xff]  }
  0xb3   :  { %1087 = vmatpush1.bf16.msra.mxu0 %v5180_v28  ;;  %1173 = vmatpush1.bf16.msra.mxu1 %v5183_v29  ;;  %v5276_v28 = vld [vmem:[#allocation2 + $0xa8] ss:$16 sps:$4 sm:$0xff]   ;;  %v5281_v29 = vld [vmem:[#allocation2 + $0xc4] ss:$16 sps:$4 sm:$0xff]  }
  0xb4   :  { %1088 = vmatprep.subr.bf16.mxu0 %v5188_v31  ;;  %1174 = vmatprep.subr.bf16.mxu1 %v5191_v32  ;;  %v5279_v31 = vld [vmem:[#allocation2 + $0xc0] ss:$16 sps:$4 sm:$0xff]   ;;  %v5282_v32 = vld [vmem:[#allocation2 + $0xc8] ss:$16 sps:$4 sm:$0xff]  }
  0xb7   :  { %1089 = vmatpush1.bf16.msra.mxu0 %v5186_v33  ;;  %1175 = vmatpush1.bf16.msra.mxu1 %v5189_v34  ;;  %v5287_v33 = vld [vmem:[#allocation2 + $0xe4] ss:$16 sps:$4 sm:$0xff]   ;;  %v5290_v34 = vld [vmem:[#allocation2 + $0xec] ss:$16 sps:$4 sm:$0xff]  }
  0xb8   :  { %1090 = vmatprep.subr.bf16.mxu0 %v5194_v35  ;;  %1176 = vmatprep.subr.bf16.mxu1 %v5197_v36  ;;  %v5285_v35 = vld [vmem:[#allocation2 + $0xe0] ss:$16 sps:$4 sm:$0xff]   ;;  %v5288_v36 = vld [vmem:[#allocation2 + $0xe8] ss:$16 sps:$4 sm:$0xff]  }
  0xbb   :  { %1091 = vmatpush1.bf16.msra.mxu0 %v5192_v37  ;;  %1177 = vmatpush1.bf16.msra.mxu1 %v5195_v38  ;;  %v5293_v37 = vld [vmem:[#allocation2 + $0x104] ss:$16 sps:$4 sm:$0xff]   ;;  %v5296_v38 = vld [vmem:[#allocation2 + $0x10c] ss:$16 sps:$4 sm:$0xff]  }
  0xbc   :  { %1092 = vmatprep.subr.bf16.mxu0 %v5200_v39  ;;  %1178 = vmatprep.subr.bf16.mxu1 %v5203_v40  ;;  %v5291_v39 = vld [vmem:[#allocation2 + $0x100] ss:$16 sps:$4 sm:$0xff]   ;;  %v5294_v40 = vld [vmem:[#allocation2 + $0x108] ss:$16 sps:$4 sm:$0xff]  }
  0xbf   :  { %1093 = vmatpush1.bf16.msra.mxu0 %v5198_v41  ;;  %1179 = vmatpush1.bf16.msra.mxu1 %v5201_v42  ;;  %v5299_v41 = vld [vmem:[#allocation2 + $0x124] ss:$16 sps:$4 sm:$0xff]   ;;  %v5302_v42 = vld [vmem:[#allocation2 + $0x12c] ss:$16 sps:$4 sm:$0xff]  }
  0xc0   :  { %1094 = vmatprep.subr.bf16.mxu0 %v5206_v43  ;;  %1180 = vmatprep.subr.bf16.mxu1 %v5209_v44  ;;  %v5297_v43 = vld [vmem:[#allocation2 + $0x120] ss:$16 sps:$4 sm:$0xff]   ;;  %v5300_v44 = vld [vmem:[#allocation2 + $0x128] ss:$16 sps:$4 sm:$0xff]  }
  0xc3   :  { %1095 = vmatpush1.bf16.msra.mxu0 %v5204_v45  ;;  %1181 = vmatpush1.bf16.msra.mxu1 %v5207_v46  ;;  %v5305_v45 = vld [vmem:[#allocation2 + $0x144] ss:$16 sps:$4 sm:$0xff]   ;;  %v5308_v46 = vld [vmem:[#allocation2 + $0x14c] ss:$16 sps:$4 sm:$0xff]  }
  0xc4   :  { %1096 = vmatprep.subr.bf16.mxu0 %v5212_v47  ;;  %1182 = vmatprep.subr.bf16.mxu1 %v5215_v48  ;;  %v5303_v47 = vld [vmem:[#allocation2 + $0x140] ss:$16 sps:$4 sm:$0xff]   ;;  %v5306_v48 = vld [vmem:[#allocation2 + $0x148] ss:$16 sps:$4 sm:$0xff]  }
  0xc7   :  { %1097 = vmatpush1.bf16.msra.mxu0 %v5210_v49  ;;  %1183 = vmatpush1.bf16.msra.mxu1 %v5213_v50  ;;  %v5311_v49 = vld [vmem:[#allocation2 + $0x164] ss:$16 sps:$4 sm:$0xff]   ;;  %v5314_v50 = vld [vmem:[#allocation2 + $0x16c] ss:$16 sps:$4 sm:$0xff]  }
  0xc8   :  { %1098 = vmatprep.subr.bf16.mxu0 %v5218_v51  ;;  %1184 = vmatprep.subr.bf16.mxu1 %v5221_v52  ;;  %v5309_v51 = vld [vmem:[#allocation2 + $0x160] ss:$16 sps:$4 sm:$0xff]   ;;  %v5312_v52 = vld [vmem:[#allocation2 + $0x168] ss:$16 sps:$4 sm:$0xff]  }
  0xcb   :  { %1099 = vmatpush1.bf16.msra.mxu0 %v5216_v53  ;;  %1185 = vmatpush1.bf16.msra.mxu1 %v5219_v54  ;;  %v5317_v53 = vld [vmem:[#allocation2 + $0x184] ss:$16 sps:$4 sm:$0xff]   ;;  %v5320_v54 = vld [vmem:[#allocation2 + $0x18c] ss:$16 sps:$4 sm:$0xff]  }
  0xcc   :  { %1100 = vmatprep.subr.bf16.mxu0 %v5224_v55  ;;  %1186 = vmatprep.subr.bf16.mxu1 %v5227_v56  ;;  %v5315_v55 = vld [vmem:[#allocation2 + $0x180] ss:$16 sps:$4 sm:$0xff]   ;;  %v5318_v56 = vld [vmem:[#allocation2 + $0x188] ss:$16 sps:$4 sm:$0xff]  }
  0xcf   :  { %1101 = vmatpush1.bf16.msra.mxu0 %v5222_v57  ;;  %1187 = vmatpush1.bf16.msra.mxu1 %v5225_v58  ;;  %v5323_v57 = vld [vmem:[#allocation2 + $0x1a4] ss:$16 sps:$4 sm:$0xff]   ;;  %v5326_v58 = vld [vmem:[#allocation2 + $0x1ac] ss:$16 sps:$4 sm:$0xff]  }
  0xd0   :  { %1102 = vmatprep.subr.bf16.mxu0 %v5230_v59  ;;  %1188 = vmatprep.subr.bf16.mxu1 %v5233_v60  ;;  %v5321_v59 = vld [vmem:[#allocation2 + $0x1a0] ss:$16 sps:$4 sm:$0xff]   ;;  %v5324_v60 = vld [vmem:[#allocation2 + $0x1a8] ss:$16 sps:$4 sm:$0xff]  }
  0xd3   :  { %1103 = vmatpush1.bf16.msra.mxu0 %v5228_v61  ;;  %1189 = vmatpush1.bf16.msra.mxu1 %v5231_v62  ;;  %v5329_v61 = vld [vmem:[#allocation2 + $0x1c4] ss:$16 sps:$4 sm:$0xff]   ;;  %v5332_v62 = vld [vmem:[#allocation2 + $0x1cc] ss:$16 sps:$4 sm:$0xff]  }
  0xd4   :  { %1104 = vmatprep.subr.bf16.mxu0 %v5236_v63  ;;  %1190 = vmatprep.subr.bf16.mxu1 %v5239_v0  ;;  %v5327_v63 = vld [vmem:[#allocation2 + $0x1c0] ss:$16 sps:$4 sm:$0xff]   ;;  %v5330_v0 = vld [vmem:[#allocation2 + $0x1c8] ss:$16 sps:$4 sm:$0xff]  }
  0xd7   :  { %1105 = vmatpush1.bf16.msra.mxu0 %v5234_v1  ;;  %1191 = vmatpush1.bf16.msra.mxu1 %v5237_v2  ;;  %v5335_v1 = vld [vmem:[#allocation2 + $0x1e4] ss:$16 sps:$4 sm:$0xff]   ;;  %v5338_v2 = vld [vmem:[#allocation2 + $0x1ec] ss:$16 sps:$4 sm:$0xff]  }
  0xd8   :  { %1863 = vmatprep.subr.bf16.mxu0 %v5245_v3  ;;  %1949 = vmatprep.subr.bf16.mxu1 %v5248_v4  ;;  %v5333_v3 = vld [vmem:[#allocation2 + $0x1e0] ss:$16 sps:$4 sm:$0xff]   ;;  %v5336_v4 = vld [vmem:[#allocation2 + $0x1e8] ss:$16 sps:$4 sm:$0xff]  }
  0xda   :  { %1107 = vmatmul.mubr.bf16.vlgmr.msra.gmra.mrb[0].mxu0 %v5240_v5  ;;  %1193 = vmatmul.mubr.bf16.vlgmr.msra.gmra.mrb[0].mxu1 %v5240_v5  ;;  %v5344_v5 = vld [vmem:[#allocation2 + $0x204] ss:$16 sps:$4 sm:$0xff]  }
  0xdb   :  { %1864 = vmatpush1.bf16.msra.mxu0 %v5243_v6  ;;  %1950 = vmatpush1.bf16.msra.mxu1 %v5246_v7  ;;  %v5347_v6 = vld [vmem:[#allocation2 + $0x20c] ss:$16 sps:$4 sm:$0xff]   ;;  %v5339_v7 = vld [vmem:[%s6215_s0] ss:$16 sps:$4 sm:$0xff]  }
  0xdc   :  { %1865 = vmatprep.subr.bf16.mxu0 %v5251_v8  ;;  %1951 = vmatprep.subr.bf16.mxu1 %v5254_v9  ;;  %v5342_v8 = vld [vmem:[#allocation2 + $0x200] ss:$16 sps:$4 sm:$0xff]   ;;  %v5345_v9 = vld [vmem:[#allocation2 + $0x208] ss:$16 sps:$4 sm:$0xff]  }
  0xdd   :  { %1895 = vmatprep.mubr.bf16.mxu0 %v5341_v12  ;;  %1981 = vmatprep.mubr.bf16.mxu1 %v5341_v12  ;;  %v5440_v12 = vld [vmem:[%s6215_s0 + $0xc] ss:$16 sps:$4 sm:$0xff]  }
  0xdf   :  { %1866 = vmatpush1.bf16.msra.mxu0 %v5249_v10  ;;  %1952 = vmatpush1.bf16.msra.mxu1 %v5252_v11  ;;  %v5350_v10 = vld [vmem:[#allocation2 + $0x224] ss:$16 sps:$4 sm:$0xff]   ;;  %v5353_v11 = vld [vmem:[#allocation2 + $0x22c] ss:$16 sps:$4 sm:$0xff]  }
  0xe0   :  { %1867 = vmatprep.subr.bf16.mxu0 %v5257_v13  ;;  %1953 = vmatprep.subr.bf16.mxu1 %v5260_v14  ;;  %v5348_v13 = vld [vmem:[#allocation2 + $0x220] ss:$16 sps:$4 sm:$0xff]   ;;  %v5351_v14 = vld [vmem:[#allocation2 + $0x228] ss:$16 sps:$4 sm:$0xff]  }
  0xe3   :  { %1868 = vmatpush1.bf16.msra.mxu0 %v5255_v15  ;;  %1954 = vmatpush1.bf16.msra.mxu1 %v5258_v16  ;;  %v5356_v15 = vld [vmem:[#allocation2 + $0x244] ss:$16 sps:$4 sm:$0xff]   ;;  %v5359_v16 = vld [vmem:[#allocation2 + $0x24c] ss:$16 sps:$4 sm:$0xff]  }
  0xe4   :  { %1869 = vmatprep.subr.bf16.mxu0 %v5263_v17  ;;  %1955 = vmatprep.subr.bf16.mxu1 %v5266_v18  ;;  %v5354_v17 = vld [vmem:[#allocation2 + $0x240] ss:$16 sps:$4 sm:$0xff]   ;;  %v5357_v18 = vld [vmem:[#allocation2 + $0x248] ss:$16 sps:$4 sm:$0xff]  }
  0xe7   :  { %1870 = vmatpush1.bf16.msra.mxu0 %v5261_v19  ;;  %1956 = vmatpush1.bf16.msra.mxu1 %v5264_v20  ;;  %v5362_v19 = vld [vmem:[#allocation2 + $0x264] ss:$16 sps:$4 sm:$0xff]   ;;  %v5365_v20 = vld [vmem:[#allocation2 + $0x26c] ss:$16 sps:$4 sm:$0xff]  }
  0xe8   :  { %1871 = vmatprep.subr.bf16.mxu0 %v5269_v21  ;;  %1957 = vmatprep.subr.bf16.mxu1 %v5272_v22  ;;  %v5360_v21 = vld [vmem:[#allocation2 + $0x260] ss:$16 sps:$4 sm:$0xff]   ;;  %v5363_v22 = vld [vmem:[#allocation2 + $0x268] ss:$16 sps:$4 sm:$0xff]  }
  0xeb   :  { %1872 = vmatpush1.bf16.msra.mxu0 %v5267_v23  ;;  %1958 = vmatpush1.bf16.msra.mxu1 %v5270_v24  ;;  %v5368_v23 = vld [vmem:[#allocation2 + $0x284] ss:$16 sps:$4 sm:$0xff]   ;;  %v5371_v24 = vld [vmem:[#allocation2 + $0x28c] ss:$16 sps:$4 sm:$0xff]  }
  0xec   :  { %1873 = vmatprep.subr.bf16.mxu0 %v5275_v25  ;;  %1959 = vmatprep.subr.bf16.mxu1 %v5278_v26  ;;  %v5366_v25 = vld [vmem:[#allocation2 + $0x280] ss:$16 sps:$4 sm:$0xff]   ;;  %v5369_v26 = vld [vmem:[#allocation2 + $0x288] ss:$16 sps:$4 sm:$0xff]  }
  0xef   :  { %1874 = vmatpush1.bf16.msra.mxu0 %v5273_v27  ;;  %1960 = vmatpush1.bf16.msra.mxu1 %v5276_v28  ;;  %v5374_v27 = vld [vmem:[#allocation2 + $0x2a4] ss:$16 sps:$4 sm:$0xff]   ;;  %v5377_v28 = vld [vmem:[#allocation2 + $0x2ac] ss:$16 sps:$4 sm:$0xff]  }
  0xf0   :  { %1875 = vmatprep.subr.bf16.mxu0 %v5281_v29  ;;  %1961 = vmatprep.subr.bf16.mxu1 %v5284_v30  ;;  %v5372_v29 = vld [vmem:[#allocation2 + $0x2a0] ss:$16 sps:$4 sm:$0xff]   ;;  %v5375_v30 = vld [vmem:[#allocation2 + $0x2a8] ss:$16 sps:$4 sm:$0xff]  }
  0xf3   :  { %1876 = vmatpush1.bf16.msra.mxu0 %v5279_v31  ;;  %1962 = vmatpush1.bf16.msra.mxu1 %v5282_v32  ;;  %v5380_v31 = vld [vmem:[#allocation2 + $0x2c4] ss:$16 sps:$4 sm:$0xff]   ;;  %v5383_v32 = vld [vmem:[#allocation2 + $0x2cc] ss:$16 sps:$4 sm:$0xff]  }
  0xf4   :  { %1877 = vmatprep.subr.bf16.mxu0 %v5287_v33  ;;  %1963 = vmatprep.subr.bf16.mxu1 %v5290_v34  ;;  %v5378_v33 = vld [vmem:[#allocation2 + $0x2c0] ss:$16 sps:$4 sm:$0xff]   ;;  %v5381_v34 = vld [vmem:[#allocation2 + $0x2c8] ss:$16 sps:$4 sm:$0xff]  }
  0xf7   :  { %1878 = vmatpush1.bf16.msra.mxu0 %v5285_v35  ;;  %1964 = vmatpush1.bf16.msra.mxu1 %v5288_v36  ;;  %v5386_v35 = vld [vmem:[#allocation2 + $0x2e4] ss:$16 sps:$4 sm:$0xff]   ;;  %v5389_v36 = vld [vmem:[#allocation2 + $0x2ec] ss:$16 sps:$4 sm:$0xff]  }
  0xf8   :  { %1879 = vmatprep.subr.bf16.mxu0 %v5293_v37  ;;  %1965 = vmatprep.subr.bf16.mxu1 %v5296_v38  ;;  %v5384_v37 = vld [vmem:[#allocation2 + $0x2e0] ss:$16 sps:$4 sm:$0xff]   ;;  %v5387_v38 = vld [vmem:[#allocation2 + $0x2e8] ss:$16 sps:$4 sm:$0xff]  }
  0xfb   :  { %1880 = vmatpush1.bf16.msra.mxu0 %v5291_v39  ;;  %1966 = vmatpush1.bf16.msra.mxu1 %v5294_v40  ;;  %v5392_v39 = vld [vmem:[#allocation2 + $0x304] ss:$16 sps:$4 sm:$0xff]   ;;  %v5395_v40 = vld [vmem:[#allocation2 + $0x30c] ss:$16 sps:$4 sm:$0xff]  }
  0xfc   :  { %1881 = vmatprep.subr.bf16.mxu0 %v5299_v41  ;;  %1967 = vmatprep.subr.bf16.mxu1 %v5302_v42  ;;  %v5390_v41 = vld [vmem:[#allocation2 + $0x300] ss:$16 sps:$4 sm:$0xff]   ;;  %v5393_v42 = vld [vmem:[#allocation2 + $0x308] ss:$16 sps:$4 sm:$0xff]  }
  0xff   :  { %1882 = vmatpush1.bf16.msra.mxu0 %v5297_v43  ;;  %1968 = vmatpush1.bf16.msra.mxu1 %v5300_v44  ;;  %v5398_v43 = vld [vmem:[#allocation2 + $0x324] ss:$16 sps:$4 sm:$0xff]   ;;  %v5401_v44 = vld [vmem:[#allocation2 + $0x32c] ss:$16 sps:$4 sm:$0xff]  }
 0x100   :  { %1883 = vmatprep.subr.bf16.mxu0 %v5305_v45  ;;  %1969 = vmatprep.subr.bf16.mxu1 %v5308_v46  ;;  %v5396_v45 = vld [vmem:[#allocation2 + $0x320] ss:$16 sps:$4 sm:$0xff]   ;;  %v5399_v46 = vld [vmem:[#allocation2 + $0x328] ss:$16 sps:$4 sm:$0xff]  }
 0x103   :  { %1884 = vmatpush1.bf16.msra.mxu0 %v5303_v47  ;;  %1970 = vmatpush1.bf16.msra.mxu1 %v5306_v48  ;;  %v5404_v47 = vld [vmem:[#allocation2 + $0x344] ss:$16 sps:$4 sm:$0xff]   ;;  %v5407_v48 = vld [vmem:[#allocation2 + $0x34c] ss:$16 sps:$4 sm:$0xff]  }
 0x104   :  { %1885 = vmatprep.subr.bf16.mxu0 %v5311_v49  ;;  %1971 = vmatprep.subr.bf16.mxu1 %v5314_v50  ;;  %v5402_v49 = vld [vmem:[#allocation2 + $0x340] ss:$16 sps:$4 sm:$0xff]   ;;  %v5405_v50 = vld [vmem:[#allocation2 + $0x348] ss:$16 sps:$4 sm:$0xff]  }
 0x107   :  { %1886 = vmatpush1.bf16.msra.mxu0 %v5309_v51  ;;  %1972 = vmatpush1.bf16.msra.mxu1 %v5312_v52  ;;  %v5410_v51 = vld [vmem:[#allocation2 + $0x364] ss:$16 sps:$4 sm:$0xff]   ;;  %v5413_v52 = vld [vmem:[#allocation2 + $0x36c] ss:$16 sps:$4 sm:$0xff]  }
 0x108   :  { %1887 = vmatprep.subr.bf16.mxu0 %v5317_v53  ;;  %1973 = vmatprep.subr.bf16.mxu1 %v5320_v54  ;;  %v5408_v53 = vld [vmem:[#allocation2 + $0x360] ss:$16 sps:$4 sm:$0xff]   ;;  %v5411_v54 = vld [vmem:[#allocation2 + $0x368] ss:$16 sps:$4 sm:$0xff]  }
 0x10b   :  { %1888 = vmatpush1.bf16.msra.mxu0 %v5315_v55  ;;  %1974 = vmatpush1.bf16.msra.mxu1 %v5318_v56  ;;  %v5416_v55 = vld [vmem:[#allocation2 + $0x384] ss:$16 sps:$4 sm:$0xff]   ;;  %v5419_v56 = vld [vmem:[#allocation2 + $0x38c] ss:$16 sps:$4 sm:$0xff]  }
 0x10c   :  { %1889 = vmatprep.subr.bf16.mxu0 %v5323_v57  ;;  %1975 = vmatprep.subr.bf16.mxu1 %v5326_v58  ;;  %v5414_v57 = vld [vmem:[#allocation2 + $0x380] ss:$16 sps:$4 sm:$0xff]   ;;  %v5417_v58 = vld [vmem:[#allocation2 + $0x388] ss:$16 sps:$4 sm:$0xff]  }
 0x10f   :  { %1890 = vmatpush1.bf16.msra.mxu0 %v5321_v59  ;;  %1976 = vmatpush1.bf16.msra.mxu1 %v5324_v60  ;;  %v5422_v59 = vld [vmem:[#allocation2 + $0x3a4] ss:$16 sps:$4 sm:$0xff]   ;;  %v5425_v60 = vld [vmem:[#allocation2 + $0x3ac] ss:$16 sps:$4 sm:$0xff]  }
 0x110   :  { %1891 = vmatprep.subr.bf16.mxu0 %v5329_v61  ;;  %1977 = vmatprep.subr.bf16.mxu1 %v5332_v62  ;;  %v5420_v61 = vld [vmem:[#allocation2 + $0x3a0] ss:$16 sps:$4 sm:$0xff]   ;;  %v5423_v62 = vld [vmem:[#allocation2 + $0x3a8] ss:$16 sps:$4 sm:$0xff]  }
 0x113   :  { %1892 = vmatpush1.bf16.msra.mxu0 %v5327_v63  ;;  %1978 = vmatpush1.bf16.msra.mxu1 %v5330_v0  ;;  %v5428_v63 = vld [vmem:[#allocation2 + $0x3c4] ss:$16 sps:$4 sm:$0xff]   ;;  %v5431_v0 = vld [vmem:[#allocation2 + $0x3cc] ss:$16 sps:$4 sm:$0xff]  }
 0x114   :  { %1893 = vmatprep.subr.bf16.mxu0 %v5335_v1  ;;  %1979 = vmatprep.subr.bf16.mxu1 %v5338_v2  ;;  %v5426_v1 = vld [vmem:[#allocation2 + $0x3c0] ss:$16 sps:$4 sm:$0xff]   ;;  %v5429_v2 = vld [vmem:[#allocation2 + $0x3c8] ss:$16 sps:$4 sm:$0xff]  }
 0x117   :  { %1894 = vmatpush1.bf16.msra.mxu0 %v5333_v3  ;;  %1980 = vmatpush1.bf16.msra.mxu1 %v5336_v4  ;;  %v5434_v3 = vld [vmem:[#allocation2 + $0x3e4] ss:$16 sps:$4 sm:$0xff]   ;;  %v5437_v4 = vld [vmem:[#allocation2 + $0x3ec] ss:$16 sps:$4 sm:$0xff]  }
 0x118   :  { %1906 = vmatprep.subr.bf16.mxu0 %v5344_v5  ;;  %1992 = vmatprep.subr.bf16.mxu1 %v5347_v6  ;;  %v5432_v5 = vld [vmem:[#allocation2 + $0x3e0] ss:$16 sps:$4 sm:$0xff]   ;;  %v5435_v6 = vld [vmem:[#allocation2 + $0x3e8] ss:$16 sps:$4 sm:$0xff]  }
 0x11a   :  { %1896 = vmatmul.mubr.bf16.vlgmr.msra.gmra.mrb[0].mxu0 %v5339_v7  ;;  %1982 = vmatmul.mubr.bf16.vlgmr.msra.gmra.mrb[0].mxu1 %v5339_v7  ;;  %v5443_v7 = vld [vmem:[#allocation6 + $0x4] ss:$16 sps:$4 sm:$0xff]  }
 0x11b   :  { %1907 = vmatpush1.bf16.msra.mxu0 %v5342_v8  ;;  %1993 = vmatpush1.bf16.msra.mxu1 %v5345_v9  ;;  %v5446_v8 = vld [vmem:[#allocation6 + $0xc] ss:$16 sps:$4 sm:$0xff]   ;;  %v5438_v9 = vld [vmem:[%s6215_s0 + $0x8] ss:$16 sps:$4 sm:$0xff]  }
 0x11c   :  { %1908 = vmatprep.subr.bf16.mxu0 %v5350_v10  ;;  %1994 = vmatprep.subr.bf16.mxu1 %v5353_v11  ;;  %v5441_v10 = vld [vmem:[#allocation6] ss:$16 sps:$4 sm:$0xff]   ;;  %v5444_v11 = vld [vmem:[#allocation6 + $0x8] ss:$16 sps:$4 sm:$0xff]  }
 0x11d   :  { %1938 = vmatprep.mubr.bf16.mxu0 %v5440_v12  ;;  %2024 = vmatprep.mubr.bf16.mxu1 %v5440_v12  ;;  %v5449_v12 = vld [vmem:[#allocation6 + $0x24] ss:$16 sps:$4 sm:$0xff]  }
 0x11f   :  { %1909 = vmatpush1.bf16.msra.mxu0 %v5348_v13  ;;  %1995 = vmatpush1.bf16.msra.mxu1 %v5351_v14  ;;  %v5452_v13 = vld [vmem:[#allocation6 + $0x2c] ss:$16 sps:$4 sm:$0xff]  }
 0x120   :  { %1910 = vmatprep.subr.bf16.mxu0 %v5356_v15  ;;  %1996 = vmatprep.subr.bf16.mxu1 %v5359_v16  ;;  %v5539_v14 = vld [vmem:[%s6217_s2 + $0x4] ss:$16 sps:$4 sm:$0xff]   ;;  %v5447_v15 = vld [vmem:[#allocation6 + $0x20] ss:$16 sps:$4 sm:$0xff]   ;;  %v5450_v16 = vld [vmem:[#allocation6 + $0x28] ss:$16 sps:$4 sm:$0xff]  }
 0x123   :  { %1911 = vmatpush1.bf16.msra.mxu0 %v5354_v17  ;;  %1997 = vmatpush1.bf16.msra.mxu1 %v5357_v18  ;;  %v5455_v17 = vld [vmem:[#allocation6 + $0x44] ss:$16 sps:$4 sm:$0xff]   ;;  %v5458_v18 = vld [vmem:[#allocation6 + $0x4c] ss:$16 sps:$4 sm:$0xff]  }
 0x124   :  { %1912 = vmatprep.subr.bf16.mxu0 %v5362_v19  ;;  %1998 = vmatprep.subr.bf16.mxu1 %v5365_v20  ;;  %v5453_v19 = vld [vmem:[#allocation6 + $0x40] ss:$16 sps:$4 sm:$0xff]   ;;  %v5456_v20 = vld [vmem:[#allocation6 + $0x48] ss:$16 sps:$4 sm:$0xff]  }
 0x127   :  { %1913 = vmatpush1.bf16.msra.mxu0 %v5360_v21  ;;  %1999 = vmatpush1.bf16.msra.mxu1 %v5363_v22  ;;  %v5461_v21 = vld [vmem:[#allocation6 + $0x64] ss:$16 sps:$4 sm:$0xff]   ;;  %v5464_v22 = vld [vmem:[#allocation6 + $0x6c] ss:$16 sps:$4 sm:$0xff]  }
 0x128   :  { %1914 = vmatprep.subr.bf16.mxu0 %v5368_v23  ;;  %2000 = vmatprep.subr.bf16.mxu1 %v5371_v24  ;;  %v5459_v23 = vld [vmem:[#allocation6 + $0x60] ss:$16 sps:$4 sm:$0xff]   ;;  %v5462_v24 = vld [vmem:[#allocation6 + $0x68] ss:$16 sps:$4 sm:$0xff]  }
 0x12b   :  { %1915 = vmatpush1.bf16.msra.mxu0 %v5366_v25  ;;  %2001 = vmatpush1.bf16.msra.mxu1 %v5369_v26  ;;  %v5467_v25 = vld [vmem:[#allocation6 + $0x84] ss:$16 sps:$4 sm:$0xff]   ;;  %v5470_v26 = vld [vmem:[#allocation6 + $0x8c] ss:$16 sps:$4 sm:$0xff]  }
 0x12c   :  { %1916 = vmatprep.subr.bf16.mxu0 %v5374_v27  ;;  %2002 = vmatprep.subr.bf16.mxu1 %v5377_v28  ;;  %v5465_v27 = vld [vmem:[#allocation6 + $0x80] ss:$16 sps:$4 sm:$0xff]   ;;  %v5468_v28 = vld [vmem:[#allocation6 + $0x88] ss:$16 sps:$4 sm:$0xff]  }
 0x12f   :  { %1917 = vmatpush1.bf16.msra.mxu0 %v5372_v29  ;;  %2003 = vmatpush1.bf16.msra.mxu1 %v5375_v30  ;;  %v5473_v29 = vld [vmem:[#allocation6 + $0xa4] ss:$16 sps:$4 sm:$0xff]   ;;  %v5476_v30 = vld [vmem:[#allocation6 + $0xac] ss:$16 sps:$4 sm:$0xff]  }
 0x130   :  { %1918 = vmatprep.subr.bf16.mxu0 %v5380_v31  ;;  %2004 = vmatprep.subr.bf16.mxu1 %v5383_v32  ;;  %v5471_v31 = vld [vmem:[#allocation6 + $0xa0] ss:$16 sps:$4 sm:$0xff]   ;;  %v5474_v32 = vld [vmem:[#allocation6 + $0xa8] ss:$16 sps:$4 sm:$0xff]  }
 0x133   :  { %1919 = vmatpush1.bf16.msra.mxu0 %v5378_v33  ;;  %2005 = vmatpush1.bf16.msra.mxu1 %v5381_v34  ;;  %v5479_v33 = vld [vmem:[#allocation6 + $0xc4] ss:$16 sps:$4 sm:$0xff]   ;;  %v5482_v34 = vld [vmem:[#allocation6 + $0xcc] ss:$16 sps:$4 sm:$0xff]  }
 0x134   :  { %1920 = vmatprep.subr.bf16.mxu0 %v5386_v35  ;;  %2006 = vmatprep.subr.bf16.mxu1 %v5389_v36  ;;  %v5477_v35 = vld [vmem:[#allocation6 + $0xc0] ss:$16 sps:$4 sm:$0xff]   ;;  %v5480_v36 = vld [vmem:[#allocation6 + $0xc8] ss:$16 sps:$4 sm:$0xff]  }
 0x137   :  { %1921 = vmatpush1.bf16.msra.mxu0 %v5384_v37  ;;  %2007 = vmatpush1.bf16.msra.mxu1 %v5387_v38  ;;  %v5485_v37 = vld [vmem:[#allocation6 + $0xe4] ss:$16 sps:$4 sm:$0xff]   ;;  %v5488_v38 = vld [vmem:[#allocation6 + $0xec] ss:$16 sps:$4 sm:$0xff]  }
 0x138   :  { %1922 = vmatprep.subr.bf16.mxu0 %v5392_v39  ;;  %2008 = vmatprep.subr.bf16.mxu1 %v5395_v40  ;;  %v5483_v39 = vld [vmem:[#allocation6 + $0xe0] ss:$16 sps:$4 sm:$0xff]   ;;  %v5486_v40 = vld [vmem:[#allocation6 + $0xe8] ss:$16 sps:$4 sm:$0xff]  }
 0x13b   :  { %1923 = vmatpush1.bf16.msra.mxu0 %v5390_v41  ;;  %2009 = vmatpush1.bf16.msra.mxu1 %v5393_v42  ;;  %v5491_v41 = vld [vmem:[#allocation6 + $0x104] ss:$16 sps:$4 sm:$0xff]   ;;  %v5494_v42 = vld [vmem:[#allocation6 + $0x10c] ss:$16 sps:$4 sm:$0xff]  }
 0x13c   :  { %1924 = vmatprep.subr.bf16.mxu0 %v5398_v43  ;;  %2010 = vmatprep.subr.bf16.mxu1 %v5401_v44  ;;  %v5489_v43 = vld [vmem:[#allocation6 + $0x100] ss:$16 sps:$4 sm:$0xff]   ;;  %v5492_v44 = vld [vmem:[#allocation6 + $0x108] ss:$16 sps:$4 sm:$0xff]  }
 0x13f   :  { %1925 = vmatpush1.bf16.msra.mxu0 %v5396_v45  ;;  %2011 = vmatpush1.bf16.msra.mxu1 %v5399_v46  ;;  %v5497_v45 = vld [vmem:[#allocation6 + $0x124] ss:$16 sps:$4 sm:$0xff]   ;;  %v5500_v46 = vld [vmem:[#allocation6 + $0x12c] ss:$16 sps:$4 sm:$0xff]  }
 0x140   :  { %1926 = vmatprep.subr.bf16.mxu0 %v5404_v47  ;;  %2012 = vmatprep.subr.bf16.mxu1 %v5407_v48  ;;  %v5495_v47 = vld [vmem:[#allocation6 + $0x120] ss:$16 sps:$4 sm:$0xff]   ;;  %v5498_v48 = vld [vmem:[#allocation6 + $0x128] ss:$16 sps:$4 sm:$0xff]  }
 0x143   :  { %1927 = vmatpush1.bf16.msra.mxu0 %v5402_v49  ;;  %2013 = vmatpush1.bf16.msra.mxu1 %v5405_v50  ;;  %v5503_v49 = vld [vmem:[#allocation6 + $0x144] ss:$16 sps:$4 sm:$0xff]   ;;  %v5506_v50 = vld [vmem:[#allocation6 + $0x14c] ss:$16 sps:$4 sm:$0xff]  }
 0x144   :  { %1928 = vmatprep.subr.bf16.mxu0 %v5410_v51  ;;  %2014 = vmatprep.subr.bf16.mxu1 %v5413_v52  ;;  %v5501_v51 = vld [vmem:[#allocation6 + $0x140] ss:$16 sps:$4 sm:$0xff]   ;;  %v5504_v52 = vld [vmem:[#allocation6 + $0x148] ss:$16 sps:$4 sm:$0xff]  }
 0x147   :  { %1929 = vmatpush1.bf16.msra.mxu0 %v5408_v53  ;;  %2015 = vmatpush1.bf16.msra.mxu1 %v5411_v54  ;;  %v5509_v53 = vld [vmem:[#allocation6 + $0x164] ss:$16 sps:$4 sm:$0xff]   ;;  %v5512_v54 = vld [vmem:[#allocation6 + $0x16c] ss:$16 sps:$4 sm:$0xff]  }
 0x148   :  { %1930 = vmatprep.subr.bf16.mxu0 %v5416_v55  ;;  %2016 = vmatprep.subr.bf16.mxu1 %v5419_v56  ;;  %v5507_v55 = vld [vmem:[#allocation6 + $0x160] ss:$16 sps:$4 sm:$0xff]   ;;  %v5510_v56 = vld [vmem:[#allocation6 + $0x168] ss:$16 sps:$4 sm:$0xff]  }
 0x14b   :  { %1931 = vmatpush1.bf16.msra.mxu0 %v5414_v57  ;;  %2017 = vmatpush1.bf16.msra.mxu1 %v5417_v58  ;;  %v5515_v57 = vld [vmem:[#allocation6 + $0x184] ss:$16 sps:$4 sm:$0xff]   ;;  %v5518_v58 = vld [vmem:[#allocation6 + $0x18c] ss:$16 sps:$4 sm:$0xff]  }
 0x14c   :  { %1932 = vmatprep.subr.bf16.mxu0 %v5422_v59  ;;  %2018 = vmatprep.subr.bf16.mxu1 %v5425_v60  ;;  %v5513_v59 = vld [vmem:[#allocation6 + $0x180] ss:$16 sps:$4 sm:$0xff]   ;;  %v5516_v60 = vld [vmem:[#allocation6 + $0x188] ss:$16 sps:$4 sm:$0xff]  }
 0x14f   :  { %1933 = vmatpush1.bf16.msra.mxu0 %v5420_v61  ;;  %2019 = vmatpush1.bf16.msra.mxu1 %v5423_v62  ;;  %v5521_v61 = vld [vmem:[#allocation6 + $0x1a4] ss:$16 sps:$4 sm:$0xff]   ;;  %v5524_v62 = vld [vmem:[#allocation6 + $0x1ac] ss:$16 sps:$4 sm:$0xff]  }
 0x150   :  { %1934 = vmatprep.subr.bf16.mxu0 %v5428_v63  ;;  %2020 = vmatprep.subr.bf16.mxu1 %v5431_v0  ;;  %v5519_v63 = vld [vmem:[#allocation6 + $0x1a0] ss:$16 sps:$4 sm:$0xff]   ;;  %v5522_v0 = vld [vmem:[#allocation6 + $0x1a8] ss:$16 sps:$4 sm:$0xff]  }
 0x153   :  { %1935 = vmatpush1.bf16.msra.mxu0 %v5426_v1  ;;  %2021 = vmatpush1.bf16.msra.mxu1 %v5429_v2  ;;  %v5527_v1 = vld [vmem:[#allocation6 + $0x1c4] ss:$16 sps:$4 sm:$0xff]   ;;  %v5530_v2 = vld [vmem:[#allocation6 + $0x1cc] ss:$16 sps:$4 sm:$0xff]  }
 0x154   :  { %1936 = vmatprep.subr.bf16.mxu0 %v5434_v3  ;;  %2022 = vmatprep.subr.bf16.mxu1 %v5437_v4  ;;  %v5525_v3 = vld [vmem:[#allocation6 + $0x1c0] ss:$16 sps:$4 sm:$0xff]   ;;  %v5528_v4 = vld [vmem:[#allocation6 + $0x1c8] ss:$16 sps:$4 sm:$0xff]  }
 0x157   :  { %1937 = vmatpush1.bf16.msra.mxu0 %v5432_v5  ;;  %2023 = vmatpush1.bf16.msra.mxu1 %v5435_v6  ;;  %v5533_v5 = vld [vmem:[#allocation6 + $0x1e4] ss:$16 sps:$4 sm:$0xff]   ;;  %v5536_v6 = vld [vmem:[#allocation6 + $0x1ec] ss:$16 sps:$4 sm:$0xff]  }
 0x158   :  { %2827 = vmatprep.subr.bf16.mxu0 %v5443_v7  ;;  %2913 = vmatprep.subr.bf16.mxu1 %v5446_v8  ;;  %v5531_v7 = vld [vmem:[#allocation6 + $0x1e0] ss:$16 sps:$4 sm:$0xff]   ;;  %v5534_v8 = vld [vmem:[#allocation6 + $0x1e8] ss:$16 sps:$4 sm:$0xff]  }
 0x15a   :  { %1939 = vmatmul.mubr.bf16.vlgmr.msra.gmra.mrb[0].mxu0 %v5438_v9  ;;  %2025 = vmatmul.mubr.bf16.vlgmr.msra.gmra.mrb[0].mxu1 %v5438_v9  ;;  %v5542_v9 = vld [vmem:[#allocation6 + $0x204] ss:$16 sps:$4 sm:$0xff]  }
 0x15b   :  { %2828 = vmatpush1.bf16.msra.mxu0 %v5441_v10  ;;  %2914 = vmatpush1.bf16.msra.mxu1 %v5444_v11  ;;  %v5545_v10 = vld [vmem:[#allocation6 + $0x20c] ss:$16 sps:$4 sm:$0xff]   ;;  %v5537_v11 = vld [vmem:[%s6217_s2] ss:$16 sps:$4 sm:$0xff]  }
 0x15c   :  { %2829 = vmatprep.subr.bf16.mxu0 %v5449_v12  ;;  %2915 = vmatprep.subr.bf16.mxu1 %v5452_v13  ;;  %v5540_v12 = vld [vmem:[#allocation6 + $0x200] ss:$16 sps:$4 sm:$0xff]   ;;  %v5543_v13 = vld [vmem:[#allocation6 + $0x208] ss:$16 sps:$4 sm:$0xff]  }
 0x15d   :  { %2859 = vmatprep.mubr.bf16.mxu0 %v5539_v14  ;;  %2945 = vmatprep.mubr.bf16.mxu1 %v5539_v14  ;;  %v5548_v14 = vld [vmem:[#allocation6 + $0x224] ss:$16 sps:$4 sm:$0xff]  }
 0x15f   :  { %2830 = vmatpush1.bf16.msra.mxu0 %v5447_v15  ;;  %2916 = vmatpush1.bf16.msra.mxu1 %v5450_v16  ;;  %v5551_v15 = vld [vmem:[#allocation6 + $0x22c] ss:$16 sps:$4 sm:$0xff]   ;;  %v5638_v16 = vld [vmem:[%s6217_s2 + $0xc] ss:$16 sps:$4 sm:$0xff]  }
 0x160   :  { %2831 = vmatprep.subr.bf16.mxu0 %v5455_v17  ;;  %2917 = vmatprep.subr.bf16.mxu1 %v5458_v18  ;;  %v5546_v17 = vld [vmem:[#allocation6 + $0x220] ss:$16 sps:$4 sm:$0xff]   ;;  %v5549_v18 = vld [vmem:[#allocation6 + $0x228] ss:$16 sps:$4 sm:$0xff]  }
 0x163   :  { %2832 = vmatpush1.bf16.msra.mxu0 %v5453_v19  ;;  %2918 = vmatpush1.bf16.msra.mxu1 %v5456_v20  ;;  %v5554_v19 = vld [vmem:[#allocation6 + $0x244] ss:$16 sps:$4 sm:$0xff]   ;;  %v5557_v20 = vld [vmem:[#allocation6 + $0x24c] ss:$16 sps:$4 sm:$0xff]  }
 0x164   :  { %2833 = vmatprep.subr.bf16.mxu0 %v5461_v21  ;;  %2919 = vmatprep.subr.bf16.mxu1 %v5464_v22  ;;  %v5552_v21 = vld [vmem:[#allocation6 + $0x240] ss:$16 sps:$4 sm:$0xff]   ;;  %v5555_v22 = vld [vmem:[#allocation6 + $0x248] ss:$16 sps:$4 sm:$0xff]  }
 0x167   :  { %2834 = vmatpush1.bf16.msra.mxu0 %v5459_v23  ;;  %2920 = vmatpush1.bf16.msra.mxu1 %v5462_v24  ;;  %v5560_v23 = vld [vmem:[#allocation6 + $0x264] ss:$16 sps:$4 sm:$0xff]   ;;  %v5563_v24 = vld [vmem:[#allocation6 + $0x26c] ss:$16 sps:$4 sm:$0xff]  }
 0x168   :  { %2835 = vmatprep.subr.bf16.mxu0 %v5467_v25  ;;  %2921 = vmatprep.subr.bf16.mxu1 %v5470_v26  ;;  %v5558_v25 = vld [vmem:[#allocation6 + $0x260] ss:$16 sps:$4 sm:$0xff]   ;;  %v5561_v26 = vld [vmem:[#allocation6 + $0x268] ss:$16 sps:$4 sm:$0xff]  }
 0x16b   :  { %2836 = vmatpush1.bf16.msra.mxu0 %v5465_v27  ;;  %2922 = vmatpush1.bf16.msra.mxu1 %v5468_v28  ;;  %v5566_v27 = vld [vmem:[#allocation6 + $0x284] ss:$16 sps:$4 sm:$0xff]   ;;  %v5569_v28 = vld [vmem:[#allocation6 + $0x28c] ss:$16 sps:$4 sm:$0xff]  }
 0x16c   :  { %2837 = vmatprep.subr.bf16.mxu0 %v5473_v29  ;;  %2923 = vmatprep.subr.bf16.mxu1 %v5476_v30  ;;  %v5564_v29 = vld [vmem:[#allocation6 + $0x280] ss:$16 sps:$4 sm:$0xff]   ;;  %v5567_v30 = vld [vmem:[#allocation6 + $0x288] ss:$16 sps:$4 sm:$0xff]  }
 0x16f   :  { %2838 = vmatpush1.bf16.msra.mxu0 %v5471_v31  ;;  %2924 = vmatpush1.bf16.msra.mxu1 %v5474_v32  ;;  %v5572_v31 = vld [vmem:[#allocation6 + $0x2a4] ss:$16 sps:$4 sm:$0xff]   ;;  %v5575_v32 = vld [vmem:[#allocation6 + $0x2ac] ss:$16 sps:$4 sm:$0xff]  }
 0x170   :  { %2839 = vmatprep.subr.bf16.mxu0 %v5479_v33  ;;  %2925 = vmatprep.subr.bf16.mxu1 %v5482_v34  ;;  %v5570_v33 = vld [vmem:[#allocation6 + $0x2a0] ss:$16 sps:$4 sm:$0xff]   ;;  %v5573_v34 = vld [vmem:[#allocation6 + $0x2a8] ss:$16 sps:$4 sm:$0xff]  }
 0x173   :  { %2840 = vmatpush1.bf16.msra.mxu0 %v5477_v35  ;;  %2926 = vmatpush1.bf16.msra.mxu1 %v5480_v36  ;;  %v5578_v35 = vld [vmem:[#allocation6 + $0x2c4] ss:$16 sps:$4 sm:$0xff]   ;;  %v5581_v36 = vld [vmem:[#allocation6 + $0x2cc] ss:$16 sps:$4 sm:$0xff]  }
 0x174   :  { %2841 = vmatprep.subr.bf16.mxu0 %v5485_v37  ;;  %2927 = vmatprep.subr.bf16.mxu1 %v5488_v38  ;;  %v5576_v37 = vld [vmem:[#allocation6 + $0x2c0] ss:$16 sps:$4 sm:$0xff]   ;;  %v5579_v38 = vld [vmem:[#allocation6 + $0x2c8] ss:$16 sps:$4 sm:$0xff]  }
 0x177   :  { %2842 = vmatpush1.bf16.msra.mxu0 %v5483_v39  ;;  %2928 = vmatpush1.bf16.msra.mxu1 %v5486_v40  ;;  %v5584_v39 = vld [vmem:[#allocation6 + $0x2e4] ss:$16 sps:$4 sm:$0xff]   ;;  %v5587_v40 = vld [vmem:[#allocation6 + $0x2ec] ss:$16 sps:$4 sm:$0xff]  }
 0x178   :  { %2843 = vmatprep.subr.bf16.mxu0 %v5491_v41  ;;  %2929 = vmatprep.subr.bf16.mxu1 %v5494_v42  ;;  %v5582_v41 = vld [vmem:[#allocation6 + $0x2e0] ss:$16 sps:$4 sm:$0xff]   ;;  %v5585_v42 = vld [vmem:[#allocation6 + $0x2e8] ss:$16 sps:$4 sm:$0xff]  }
 0x17b   :  { %2844 = vmatpush1.bf16.msra.mxu0 %v5489_v43  ;;  %2930 = vmatpush1.bf16.msra.mxu1 %v5492_v44  ;;  %v5590_v43 = vld [vmem:[#allocation6 + $0x304] ss:$16 sps:$4 sm:$0xff]   ;;  %v5593_v44 = vld [vmem:[#allocation6 + $0x30c] ss:$16 sps:$4 sm:$0xff]  }
 0x17c   :  { %2845 = vmatprep.subr.bf16.mxu0 %v5497_v45  ;;  %2931 = vmatprep.subr.bf16.mxu1 %v5500_v46  ;;  %v5588_v45 = vld [vmem:[#allocation6 + $0x300] ss:$16 sps:$4 sm:$0xff]   ;;  %v5591_v46 = vld [vmem:[#allocation6 + $0x308] ss:$16 sps:$4 sm:$0xff]  }
 0x17f   :  { %2846 = vmatpush1.bf16.msra.mxu0 %v5495_v47  ;;  %2932 = vmatpush1.bf16.msra.mxu1 %v5498_v48  ;;  %v5596_v47 = vld [vmem:[#allocation6 + $0x324] ss:$16 sps:$4 sm:$0xff]   ;;  %v5599_v48 = vld [vmem:[#allocation6 + $0x32c] ss:$16 sps:$4 sm:$0xff]  }
 0x180   :  { %2847 = vmatprep.subr.bf16.mxu0 %v5503_v49  ;;  %2933 = vmatprep.subr.bf16.mxu1 %v5506_v50  ;;  %v5594_v49 = vld [vmem:[#allocation6 + $0x320] ss:$16 sps:$4 sm:$0xff]   ;;  %v5597_v50 = vld [vmem:[#allocation6 + $0x328] ss:$16 sps:$4 sm:$0xff]  }
 0x183   :  { %2848 = vmatpush1.bf16.msra.mxu0 %v5501_v51  ;;  %2934 = vmatpush1.bf16.msra.mxu1 %v5504_v52  ;;  %v5602_v51 = vld [vmem:[#allocation6 + $0x344] ss:$16 sps:$4 sm:$0xff]   ;;  %v5605_v52 = vld [vmem:[#allocation6 + $0x34c] ss:$16 sps:$4 sm:$0xff]  }
 0x184   :  { %2849 = vmatprep.subr.bf16.mxu0 %v5509_v53  ;;  %2935 = vmatprep.subr.bf16.mxu1 %v5512_v54  ;;  %v5600_v53 = vld [vmem:[#allocation6 + $0x340] ss:$16 sps:$4 sm:$0xff]   ;;  %v5603_v54 = vld [vmem:[#allocation6 + $0x348] ss:$16 sps:$4 sm:$0xff]  }
 0x187   :  { %2850 = vmatpush1.bf16.msra.mxu0 %v5507_v55  ;;  %2936 = vmatpush1.bf16.msra.mxu1 %v5510_v56  ;;  %v5608_v55 = vld [vmem:[#allocation6 + $0x364] ss:$16 sps:$4 sm:$0xff]   ;;  %v5611_v56 = vld [vmem:[#allocation6 + $0x36c] ss:$16 sps:$4 sm:$0xff]  }
 0x188   :  { %2851 = vmatprep.subr.bf16.mxu0 %v5515_v57  ;;  %2937 = vmatprep.subr.bf16.mxu1 %v5518_v58  ;;  %v5606_v57 = vld [vmem:[#allocation6 + $0x360] ss:$16 sps:$4 sm:$0xff]   ;;  %v5609_v58 = vld [vmem:[#allocation6 + $0x368] ss:$16 sps:$4 sm:$0xff]  }
 0x18b   :  { %2852 = vmatpush1.bf16.msra.mxu0 %v5513_v59  ;;  %2938 = vmatpush1.bf16.msra.mxu1 %v5516_v60  ;;  %v5614_v59 = vld [vmem:[#allocation6 + $0x384] ss:$16 sps:$4 sm:$0xff]   ;;  %v5617_v60 = vld [vmem:[#allocation6 + $0x38c] ss:$16 sps:$4 sm:$0xff]  }
 0x18c   :  { %2853 = vmatprep.subr.bf16.mxu0 %v5521_v61  ;;  %2939 = vmatprep.subr.bf16.mxu1 %v5524_v62  ;;  %v5612_v61 = vld [vmem:[#allocation6 + $0x380] ss:$16 sps:$4 sm:$0xff]   ;;  %v5615_v62 = vld [vmem:[#allocation6 + $0x388] ss:$16 sps:$4 sm:$0xff]  }
 0x18f   :  { %2854 = vmatpush1.bf16.msra.mxu0 %v5519_v63  ;;  %2940 = vmatpush1.bf16.msra.mxu1 %v5522_v0  ;;  %v5620_v63 = vld [vmem:[#allocation6 + $0x3a4] ss:$16 sps:$4 sm:$0xff]   ;;  %v5623_v0 = vld [vmem:[#allocation6 + $0x3ac] ss:$16 sps:$4 sm:$0xff]  }
 0x190   :  { %2855 = vmatprep.subr.bf16.mxu0 %v5527_v1  ;;  %2941 = vmatprep.subr.bf16.mxu1 %v5530_v2  ;;  %v5618_v1 = vld [vmem:[#allocation6 + $0x3a0] ss:$16 sps:$4 sm:$0xff]   ;;  %v5621_v2 = vld [vmem:[#allocation6 + $0x3a8] ss:$16 sps:$4 sm:$0xff]  }
 0x193   :  { %2856 = vmatpush1.bf16.msra.mxu0 %v5525_v3  ;;  %2942 = vmatpush1.bf16.msra.mxu1 %v5528_v4  ;;  %v5626_v3 = vld [vmem:[#allocation6 + $0x3c4] ss:$16 sps:$4 sm:$0xff]   ;;  %v5629_v4 = vld [vmem:[#allocation6 + $0x3cc] ss:$16 sps:$4 sm:$0xff]  }
 0x194   :  { %2857 = vmatprep.subr.bf16.mxu0 %v5533_v5  ;;  %2943 = vmatprep.subr.bf16.mxu1 %v5536_v6  ;;  %v5624_v5 = vld [vmem:[#allocation6 + $0x3c0] ss:$16 sps:$4 sm:$0xff]   ;;  %v5627_v6 = vld [vmem:[#allocation6 + $0x3c8] ss:$16 sps:$4 sm:$0xff]  }
 0x197   :  { %2858 = vmatpush1.bf16.msra.mxu0 %v5531_v7  ;;  %2944 = vmatpush1.bf16.msra.mxu1 %v5534_v8  ;;  %v5632_v7 = vld [vmem:[#allocation6 + $0x3e4] ss:$16 sps:$4 sm:$0xff]   ;;  %v5635_v8 = vld [vmem:[#allocation6 + $0x3ec] ss:$16 sps:$4 sm:$0xff]  }
 0x198   :  { %2870 = vmatprep.subr.bf16.mxu0 %v5542_v9  ;;  %2956 = vmatprep.subr.bf16.mxu1 %v5545_v10  ;;  %v5630_v9 = vld [vmem:[#allocation6 + $0x3e0] ss:$16 sps:$4 sm:$0xff]   ;;  %v5633_v10 = vld [vmem:[#allocation6 + $0x3e8] ss:$16 sps:$4 sm:$0xff]  }
 0x19a   :  { %2860 = vmatmul.mubr.bf16.vlgmr.msra.gmra.mrb[0].mxu0 %v5537_v11  ;;  %2946 = vmatmul.mubr.bf16.vlgmr.msra.gmra.mrb[0].mxu1 %v5537_v11  ;;  %v5641_v11 = vld [vmem:[#allocation7 + $0x4] ss:$16 sps:$4 sm:$0xff]  }
 0x19b   :  { %2871 = vmatpush1.bf16.msra.mxu0 %v5540_v12  ;;  %2957 = vmatpush1.bf16.msra.mxu1 %v5543_v13  ;;  %v5644_v12 = vld [vmem:[#allocation7 + $0xc] ss:$16 sps:$4 sm:$0xff]   ;;  %v5636_v13 = vld [vmem:[%s6217_s2 + $0x8] ss:$16 sps:$4 sm:$0xff]  }
 0x19c   :  { %2872 = vmatprep.subr.bf16.mxu0 %v5548_v14  ;;  %2958 = vmatprep.subr.bf16.mxu1 %v5551_v15  ;;  %v5639_v14 = vld [vmem:[#allocation7] ss:$16 sps:$4 sm:$0xff]   ;;  %v5642_v15 = vld [vmem:[#allocation7 + $0x8] ss:$16 sps:$4 sm:$0xff]  }
 0x19d   :  { %2902 = vmatprep.mubr.bf16.mxu0 %v5638_v16  ;;  %2988 = vmatprep.mubr.bf16.mxu1 %v5638_v16  ;;  %v5647_v16 = vld [vmem:[#allocation7 + $0x24] ss:$16 sps:$4 sm:$0xff]  }
 0x19f   :  { %2873 = vmatpush1.bf16.msra.mxu0 %v5546_v17  ;;  %2959 = vmatpush1.bf16.msra.mxu1 %v5549_v18  ;;  %v5650_v17 = vld [vmem:[#allocation7 + $0x2c] ss:$16 sps:$4 sm:$0xff]   ;;  %v5645_v18 = vld [vmem:[#allocation7 + $0x20] ss:$16 sps:$4 sm:$0xff]  }
 0x1a0   :  { %2874 = vmatprep.subr.bf16.mxu0 %v5554_v19  ;;  %2960 = vmatprep.subr.bf16.mxu1 %v5557_v20  ;;  %v5648_v19 = vld [vmem:[#allocation7 + $0x28] ss:$16 sps:$4 sm:$0xff]   ;;  %v5653_v20 = vld [vmem:[#allocation7 + $0x44] ss:$16 sps:$4 sm:$0xff]  }
 0x1a3   :  { %2875 = vmatpush1.bf16.msra.mxu0 %v5552_v21  ;;  %2961 = vmatpush1.bf16.msra.mxu1 %v5555_v22  ;;  %v5656_v21 = vld [vmem:[#allocation7 + $0x4c] ss:$16 sps:$4 sm:$0xff]   ;;  %v5651_v22 = vld [vmem:[#allocation7 + $0x40] ss:$16 sps:$4 sm:$0xff]  }
 0x1a4   :  { %2876 = vmatprep.subr.bf16.mxu0 %v5560_v23  ;;  %2962 = vmatprep.subr.bf16.mxu1 %v5563_v24  ;;  %v5654_v23 = vld [vmem:[#allocation7 + $0x48] ss:$16 sps:$4 sm:$0xff]   ;;  %v5659_v24 = vld [vmem:[#allocation7 + $0x64] ss:$16 sps:$4 sm:$0xff]  }
 0x1a7   :  { %2877 = vmatpush1.bf16.msra.mxu0 %v5558_v25  ;;  %2963 = vmatpush1.bf16.msra.mxu1 %v5561_v26  ;;  %v5662_v25 = vld [vmem:[#allocation7 + $0x6c] ss:$16 sps:$4 sm:$0xff]   ;;  %v5657_v26 = vld [vmem:[#allocation7 + $0x60] ss:$16 sps:$4 sm:$0xff]  }
 0x1a8   :  { %2878 = vmatprep.subr.bf16.mxu0 %v5566_v27  ;;  %2964 = vmatprep.subr.bf16.mxu1 %v5569_v28  ;;  %v5660_v27 = vld [vmem:[#allocation7 + $0x68] ss:$16 sps:$4 sm:$0xff]   ;;  %v5665_v28 = vld [vmem:[#allocation7 + $0x84] ss:$16 sps:$4 sm:$0xff]  }
 0x1ab   :  { %2879 = vmatpush1.bf16.msra.mxu0 %v5564_v29  ;;  %2965 = vmatpush1.bf16.msra.mxu1 %v5567_v30  ;;  %v5668_v29 = vld [vmem:[#allocation7 + $0x8c] ss:$16 sps:$4 sm:$0xff]   ;;  %v5663_v30 = vld [vmem:[#allocation7 + $0x80] ss:$16 sps:$4 sm:$0xff]  }
 0x1ac   :  { %2880 = vmatprep.subr.bf16.mxu0 %v5572_v31  ;;  %2966 = vmatprep.subr.bf16.mxu1 %v5575_v32  ;;  %v5666_v31 = vld [vmem:[#allocation7 + $0x88] ss:$16 sps:$4 sm:$0xff]   ;;  %v5671_v32 = vld [vmem:[#allocation7 + $0xa4] ss:$16 sps:$4 sm:$0xff]  }
 0x1af   :  { %2881 = vmatpush1.bf16.msra.mxu0 %v5570_v33  ;;  %2967 = vmatpush1.bf16.msra.mxu1 %v5573_v34  ;;  %v5674_v33 = vld [vmem:[#allocation7 + $0xac] ss:$16 sps:$4 sm:$0xff]   ;;  %v5669_v34 = vld [vmem:[#allocation7 + $0xa0] ss:$16 sps:$4 sm:$0xff]  }
 0x1b0   :  { %2882 = vmatprep.subr.bf16.mxu0 %v5578_v35  ;;  %2968 = vmatprep.subr.bf16.mxu1 %v5581_v36  ;;  %v5672_v35 = vld [vmem:[#allocation7 + $0xa8] ss:$16 sps:$4 sm:$0xff]   ;;  %v5677_v36 = vld [vmem:[#allocation7 + $0xc4] ss:$16 sps:$4 sm:$0xff]  }
 0x1b3   :  { %2883 = vmatpush1.bf16.msra.mxu0 %v5576_v37  ;;  %2969 = vmatpush1.bf16.msra.mxu1 %v5579_v38  ;;  %v5680_v37 = vld [vmem:[#allocation7 + $0xcc] ss:$16 sps:$4 sm:$0xff]   ;;  %v5675_v38 = vld [vmem:[#allocation7 + $0xc0] ss:$16 sps:$4 sm:$0xff]  }
 0x1b4   :  { %2884 = vmatprep.subr.bf16.mxu0 %v5584_v39  ;;  %2970 = vmatprep.subr.bf16.mxu1 %v5587_v40  ;;  %v5678_v39 = vld [vmem:[#allocation7 + $0xc8] ss:$16 sps:$4 sm:$0xff]   ;;  %v5683_v40 = vld [vmem:[#allocation7 + $0xe4] ss:$16 sps:$4 sm:$0xff]  }
 0x1b7   :  { %2885 = vmatpush1.bf16.msra.mxu0 %v5582_v41  ;;  %2971 = vmatpush1.bf16.msra.mxu1 %v5585_v42  ;;  %v5686_v41 = vld [vmem:[#allocation7 + $0xec] ss:$16 sps:$4 sm:$0xff]   ;;  %v5681_v42 = vld [vmem:[#allocation7 + $0xe0] ss:$16 sps:$4 sm:$0xff]  }
 0x1b8   :  { %2886 = vmatprep.subr.bf16.mxu0 %v5590_v43  ;;  %2972 = vmatprep.subr.bf16.mxu1 %v5593_v44  ;;  %v5684_v43 = vld [vmem:[#allocation7 + $0xe8] ss:$16 sps:$4 sm:$0xff]   ;;  %v5689_v44 = vld [vmem:[#allocation7 + $0x104] ss:$16 sps:$4 sm:$0xff]  }
 0x1bb   :  { %2887 = vmatpush1.bf16.msra.mxu0 %v5588_v45  ;;  %2973 = vmatpush1.bf16.msra.mxu1 %v5591_v46  ;;  %v5692_v45 = vld [vmem:[#allocation7 + $0x10c] ss:$16 sps:$4 sm:$0xff]   ;;  %v5687_v46 = vld [vmem:[#allocation7 + $0x100] ss:$16 sps:$4 sm:$0xff]  }
 0x1bc   :  { %2888 = vmatprep.subr.bf16.mxu0 %v5596_v47  ;;  %2974 = vmatprep.subr.bf16.mxu1 %v5599_v48  ;;  %v5690_v47 = vld [vmem:[#allocation7 + $0x108] ss:$16 sps:$4 sm:$0xff]   ;;  %v5695_v48 = vld [vmem:[#allocation7 + $0x124] ss:$16 sps:$4 sm:$0xff]  }
 0x1bf   :  { %2889 = vmatpush1.bf16.msra.mxu0 %v5594_v49  ;;  %2975 = vmatpush1.bf16.msra.mxu1 %v5597_v50  ;;  %v5698_v49 = vld [vmem:[#allocation7 + $0x12c] ss:$16 sps:$4 sm:$0xff]   ;;  %v5693_v50 = vld [vmem:[#allocation7 + $0x120] ss:$16 sps:$4 sm:$0xff]  }
 0x1c0   :  { %2890 = vmatprep.subr.bf16.mxu0 %v5602_v51  ;;  %2976 = vmatprep.subr.bf16.mxu1 %v5605_v52  ;;  %v5696_v51 = vld [vmem:[#allocation7 + $0x128] ss:$16 sps:$4 sm:$0xff]   ;;  %v5701_v52 = vld [vmem:[#allocation7 + $0x144] ss:$16 sps:$4 sm:$0xff]  }
 0x1c3   :  { %2891 = vmatpush1.bf16.msra.mxu0 %v5600_v53  ;;  %2977 = vmatpush1.bf16.msra.mxu1 %v5603_v54  ;;  %v5704_v53 = vld [vmem:[#allocation7 + $0x14c] ss:$16 sps:$4 sm:$0xff]   ;;  %v5699_v54 = vld [vmem:[#allocation7 + $0x140] ss:$16 sps:$4 sm:$0xff]  }
 0x1c4   :  { %2892 = vmatprep.subr.bf16.mxu0 %v5608_v55  ;;  %2978 = vmatprep.subr.bf16.mxu1 %v5611_v56  ;;  %v5702_v55 = vld [vmem:[#allocation7 + $0x148] ss:$16 sps:$4 sm:$0xff]   ;;  %v5707_v56 = vld [vmem:[#allocation7 + $0x164] ss:$16 sps:$4 sm:$0xff]  }
 0x1c7   :  { %2893 = vmatpush1.bf16.msra.mxu0 %v5606_v57  ;;  %2979 = vmatpush1.bf16.msra.mxu1 %v5609_v58  ;;  %v5710_v57 = vld [vmem:[#allocation7 + $0x16c] ss:$16 sps:$4 sm:$0xff]   ;;  %v5705_v58 = vld [vmem:[#allocation7 + $0x160] ss:$16 sps:$4 sm:$0xff]  }
 0x1c8   :  { %2894 = vmatprep.subr.bf16.mxu0 %v5614_v59  ;;  %2980 = vmatprep.subr.bf16.mxu1 %v5617_v60  ;;  %v5708_v59 = vld [vmem:[#allocation7 + $0x168] ss:$16 sps:$4 sm:$0xff]   ;;  %v5713_v60 = vld [vmem:[#allocation7 + $0x184] ss:$16 sps:$4 sm:$0xff]  }
 0x1cb   :  { %2895 = vmatpush1.bf16.msra.mxu0 %v5612_v61  ;;  %2981 = vmatpush1.bf16.msra.mxu1 %v5615_v62  ;;  %v5716_v61 = vld [vmem:[#allocation7 + $0x18c] ss:$16 sps:$4 sm:$0xff]   ;;  %v5711_v62 = vld [vmem:[#allocation7 + $0x180] ss:$16 sps:$4 sm:$0xff]  }
 0x1cc   :  { %2896 = vmatprep.subr.bf16.mxu0 %v5620_v63  ;;  %2982 = vmatprep.subr.bf16.mxu1 %v5623_v0  ;;  %v5714_v63 = vld [vmem:[#allocation7 + $0x188] ss:$16 sps:$4 sm:$0xff]   ;;  %v5719_v0 = vld [vmem:[#allocation7 + $0x1a4] ss:$16 sps:$4 sm:$0xff]  }
 0x1cf   :  { %2897 = vmatpush1.bf16.msra.mxu0 %v5618_v1  ;;  %2983 = vmatpush1.bf16.msra.mxu1 %v5621_v2  ;;  %v5722_v1 = vld [vmem:[#allocation7 + $0x1ac] ss:$16 sps:$4 sm:$0xff]   ;;  %v5717_v2 = vld [vmem:[#allocation7 + $0x1a0] ss:$16 sps:$4 sm:$0xff]  }
 0x1d0   :  { %2898 = vmatprep.subr.bf16.mxu0 %v5626_v3  ;;  %2984 = vmatprep.subr.bf16.mxu1 %v5629_v4  ;;  %v5720_v3 = vld [vmem:[#allocation7 + $0x1a8] ss:$16 sps:$4 sm:$0xff]   ;;  %v5725_v4 = vld [vmem:[#allocation7 + $0x1c4] ss:$16 sps:$4 sm:$0xff]  }
 0x1d3   :  { %2899 = vmatpush1.bf16.msra.mxu0 %v5624_v5  ;;  %2985 = vmatpush1.bf16.msra.mxu1 %v5627_v6  ;;  %v5728_v5 = vld [vmem:[#allocation7 + $0x1cc] ss:$16 sps:$4 sm:$0xff]   ;;  %v5723_v6 = vld [vmem:[#allocation7 + $0x1c0] ss:$16 sps:$4 sm:$0xff]  }
 0x1d4   :  { %2900 = vmatprep.subr.bf16.mxu0 %v5632_v7  ;;  %2986 = vmatprep.subr.bf16.mxu1 %v5635_v8  ;;  %v5726_v7 = vld [vmem:[#allocation7 + $0x1c8] ss:$16 sps:$4 sm:$0xff]   ;;  %v5731_v8 = vld [vmem:[#allocation7 + $0x1e4] ss:$16 sps:$4 sm:$0xff]  }
 0x1d7   :  { %2901 = vmatpush1.bf16.msra.mxu0 %v5630_v9  ;;  %2987 = vmatpush1.bf16.msra.mxu1 %v5633_v10  ;;  %v5734_v9 = vld [vmem:[#allocation7 + $0x1ec] ss:$16 sps:$4 sm:$0xff]   ;;  %v5729_v10 = vld [vmem:[#allocation7 + $0x1e0] ss:$16 sps:$4 sm:$0xff]  }
 0x1d8   :  { %3839 = vmatprep.subr.bf16.mxu0 %v5641_v11  ;;  %3925 = vmatprep.subr.bf16.mxu1 %v5644_v12  ;;  %v5732_v11 = vld [vmem:[#allocation7 + $0x1e8] ss:$16 sps:$4 sm:$0xff]   ;;  %v5737_v12 = vld [vmem:[#allocation7 + $0x204] ss:$16 sps:$4 sm:$0xff]  }
 0x1da   :  { %2903 = vmatmul.mubr.bf16.vlgmr.msra.gmra.mrb[0].mxu0 %v5636_v13  ;;  %2989 = vmatmul.mubr.bf16.vlgmr.msra.gmra.mrb[0].mxu1 %v5636_v13  ;;  %v5740_v13 = vld [vmem:[#allocation7 + $0x20c] ss:$16 sps:$4 sm:$0xff]  }
 0x1db   :  { %3840 = vmatpush1.bf16.msra.mxu0 %v5639_v14  ;;  %3926 = vmatpush1.bf16.msra.mxu1 %v5642_v15  ;;  %v3009_v14 = vlaneseq }
 0x1dc   :  { %3841 = vmatprep.subr.bf16.mxu0 %v5647_v16  ;;  %3927 = vmatprep.subr.bf16.mxu1 %v5650_v17 }
 0x1dd   :  { %v6174_v15 = vshrl.u32 %v3009_v14, 7  ;;  %v5774_v14 = vld [vmem:[#allocation7 + $0x2c8] ss:$16 sps:$4 sm:$0xff]  }
 0x1df   :  { %3842 = vmatpush1.bf16.msra.mxu0 %v5645_v18  ;;  %3928 = vmatpush1.bf16.msra.mxu1 %v5648_v19  ;;  %v3011_v16 = vsub.s32 0, %v6174_v15  ;;  %v3019_v17 = vsub.s32 2, %v6174_v15  ;;  %v3007_v18 = vld [vmem:[%s6221_s6] sm:$0xf]  ;;  %v3015_v19 = vsub.s32 1, %v6174_v15 }
 0x1e0   :  { %3843 = vmatprep.subr.bf16.mxu0 %v5653_v20  ;;  %3929 = vmatprep.subr.bf16.mxu1 %v5656_v21  ;;  %v3023_v20 = vsub.s32 3, %v6174_v15 }
 0x1e1   :  { %v3012_v21 = vrot.slane %v3007_v18, %v3011_v16 }
 0x1e3   :  { %3844 = vmatpush1.bf16.msra.mxu0 %v5651_v22  ;;  %3930 = vmatpush1.bf16.msra.mxu1 %v5654_v23  ;;  %v3020_v22 = vrot.slane %v3007_v18, %v3019_v17  ;;  %v3016_v23 = vrot.slane %v3007_v18, %v3015_v19 }
 0x1e4   :  { %3845 = vmatprep.subr.bf16.mxu0 %v5659_v24  ;;  %3931 = vmatprep.subr.bf16.mxu1 %v5662_v25  ;;  %v3024_v24 = vrot.slane %v3007_v18, %v3023_v20  ;;  %v5779_v18 = vld [vmem:[#allocation7 + $0x2e4] ss:$16 sps:$4 sm:$0xff]  }
 0x1e7   :  { %3846 = vmatpush1.bf16.msra.mxu0 %v5657_v26  ;;  %3932 = vmatpush1.bf16.msra.mxu1 %v5660_v27 }
 0x1e8   :  { %3847 = vmatprep.subr.bf16.mxu0 %v5665_v28  ;;  %3933 = vmatprep.subr.bf16.mxu1 %v5668_v29 }
 0x1eb   :  { %3848 = vmatpush1.bf16.msra.mxu0 %v5663_v30  ;;  %3934 = vmatpush1.bf16.msra.mxu1 %v5666_v31 }
 0x1ec   :  { %3849 = vmatprep.subr.bf16.mxu0 %v5671_v32  ;;  %3935 = vmatprep.subr.bf16.mxu1 %v5674_v33 }
 0x1ef   :  { %3850 = vmatpush1.bf16.msra.mxu0 %v5669_v34  ;;  %3936 = vmatpush1.bf16.msra.mxu1 %v5672_v35 }
 0x1f0   :  { %3851 = vmatprep.subr.bf16.mxu0 %v5677_v36  ;;  %3937 = vmatprep.subr.bf16.mxu1 %v5680_v37 }
 0x1f3   :  { %3852 = vmatpush1.bf16.msra.mxu0 %v5675_v38  ;;  %3938 = vmatpush1.bf16.msra.mxu1 %v5678_v39 }
 0x1f4   :  { %3853 = vmatprep.subr.bf16.mxu0 %v5683_v40  ;;  %3939 = vmatprep.subr.bf16.mxu1 %v5686_v41 }
 0x1f7   :  { %3854 = vmatpush1.bf16.msra.mxu0 %v5681_v42  ;;  %3940 = vmatpush1.bf16.msra.mxu1 %v5684_v43 }
 0x1f8   :  { %3855 = vmatprep.subr.bf16.mxu0 %v5689_v44  ;;  %3941 = vmatprep.subr.bf16.mxu1 %v5692_v45 }
 0x1fb   :  { %3856 = vmatpush1.bf16.msra.mxu0 %v5687_v46  ;;  %3942 = vmatpush1.bf16.msra.mxu1 %v5690_v47 }
 0x1fc   :  { %3857 = vmatprep.subr.bf16.mxu0 %v5695_v48  ;;  %3943 = vmatprep.subr.bf16.mxu1 %v5698_v49 }
 0x1ff   :  { %3858 = vmatpush1.bf16.msra.mxu0 %v5693_v50  ;;  %3944 = vmatpush1.bf16.msra.mxu1 %v5696_v51 }
 0x200   :  { %3859 = vmatprep.subr.bf16.mxu0 %v5701_v52  ;;  %3945 = vmatprep.subr.bf16.mxu1 %v5704_v53  ;;  %v5735_v53 = vld [vmem:[#allocation7 + $0x200] ss:$16 sps:$4 sm:$0xff]  }
 0x203   :  { %3860 = vmatpush1.bf16.msra.mxu0 %v5699_v54  ;;  %3946 = vmatpush1.bf16.msra.mxu1 %v5702_v55  ;;  %v5738_v54 = vld [vmem:[#allocation7 + $0x208] ss:$16 sps:$4 sm:$0xff]   ;;  %v5743_v55 = vld [vmem:[#allocation7 + $0x224] ss:$16 sps:$4 sm:$0xff]  }
 0x204   :  { %3861 = vmatprep.subr.bf16.mxu0 %v5707_v56  ;;  %3947 = vmatprep.subr.bf16.mxu1 %v5710_v57  ;;  %v5746_v56 = vld [vmem:[#allocation7 + $0x22c] ss:$16 sps:$4 sm:$0xff]   ;;  %v5741_v57 = vld [vmem:[#allocation7 + $0x220] ss:$16 sps:$4 sm:$0xff]  }
 0x207   :  { %3862 = vmatpush1.bf16.msra.mxu0 %v5705_v58  ;;  %3948 = vmatpush1.bf16.msra.mxu1 %v5708_v59  ;;  %v5744_v58 = vld [vmem:[#allocation7 + $0x228] ss:$16 sps:$4 sm:$0xff]   ;;  %v5749_v59 = vld [vmem:[#allocation7 + $0x244] ss:$16 sps:$4 sm:$0xff]  }
 0x208   :  { %3863 = vmatprep.subr.bf16.mxu0 %v5713_v60  ;;  %3949 = vmatprep.subr.bf16.mxu1 %v5716_v61  ;;  %v5752_v60 = vld [vmem:[#allocation7 + $0x24c] ss:$16 sps:$4 sm:$0xff]   ;;  %v5747_v61 = vld [vmem:[#allocation7 + $0x240] ss:$16 sps:$4 sm:$0xff]  }
 0x20b   :  { %3864 = vmatpush1.bf16.msra.mxu0 %v5711_v62  ;;  %3950 = vmatpush1.bf16.msra.mxu1 %v5714_v63  ;;  %v5750_v62 = vld [vmem:[#allocation7 + $0x248] ss:$16 sps:$4 sm:$0xff]   ;;  %v5755_v63 = vld [vmem:[#allocation7 + $0x264] ss:$16 sps:$4 sm:$0xff]  }
 0x20c   :  { %3865 = vmatprep.subr.bf16.mxu0 %v5719_v0  ;;  %3951 = vmatprep.subr.bf16.mxu1 %v5722_v1  ;;  %v5758_v0 = vld [vmem:[#allocation7 + $0x26c] ss:$16 sps:$4 sm:$0xff]   ;;  %v5753_v1 = vld [vmem:[#allocation7 + $0x260] ss:$16 sps:$4 sm:$0xff]  }
 0x20f   :  { %3866 = vmatpush1.bf16.msra.mxu0 %v5717_v2  ;;  %3952 = vmatpush1.bf16.msra.mxu1 %v5720_v3  ;;  %v5756_v2 = vld [vmem:[#allocation7 + $0x268] ss:$16 sps:$4 sm:$0xff]   ;;  %v5761_v3 = vld [vmem:[#allocation7 + $0x284] ss:$16 sps:$4 sm:$0xff]  }
 0x210   :  { %3867 = vmatprep.subr.bf16.mxu0 %v5725_v4  ;;  %3953 = vmatprep.subr.bf16.mxu1 %v5728_v5  ;;  %v5764_v4 = vld [vmem:[#allocation7 + $0x28c] ss:$16 sps:$4 sm:$0xff]   ;;  %v5759_v5 = vld [vmem:[#allocation7 + $0x280] ss:$16 sps:$4 sm:$0xff]  }
 0x213   :  { %3868 = vmatpush1.bf16.msra.mxu0 %v5723_v6  ;;  %3954 = vmatpush1.bf16.msra.mxu1 %v5726_v7  ;;  %v5762_v6 = vld [vmem:[#allocation7 + $0x288] ss:$16 sps:$4 sm:$0xff]   ;;  %v5767_v7 = vld [vmem:[#allocation7 + $0x2a4] ss:$16 sps:$4 sm:$0xff]  }
 0x214   :  { %3869 = vmatprep.subr.bf16.mxu0 %v5731_v8  ;;  %3955 = vmatprep.subr.bf16.mxu1 %v5734_v9  ;;  %v5770_v8 = vld [vmem:[#allocation7 + $0x2ac] ss:$16 sps:$4 sm:$0xff]   ;;  %v5765_v9 = vld [vmem:[#allocation7 + $0x2a0] ss:$16 sps:$4 sm:$0xff]  }
 0x217   :  { %3870 = vmatpush1.bf16.msra.mxu0 %v5729_v10  ;;  %3956 = vmatpush1.bf16.msra.mxu1 %v5732_v11  ;;  %v5768_v10 = vld [vmem:[#allocation7 + $0x2a8] ss:$16 sps:$4 sm:$0xff]   ;;  %v5773_v11 = vld [vmem:[#allocation7 + $0x2c4] ss:$16 sps:$4 sm:$0xff]  }
 0x218   :  { %3882 = vmatprep.subr.bf16.mxu0 %v5737_v12  ;;  %3968 = vmatprep.subr.bf16.mxu1 %v5740_v13  ;;  %v5776_v12 = vld [vmem:[#allocation7 + $0x2cc] ss:$16 sps:$4 sm:$0xff]   ;;  %v5771_v13 = vld [vmem:[#allocation7 + $0x2c0] ss:$16 sps:$4 sm:$0xff]  }
 0x2ad   :  { %v2904_v25 = vpop.f32.mrb[0].mxu0  ;;  %v2990_v26 = vpop.f32.mrb[0].mxu1 }
 0x2ae   :  { %v3029_v27 = vadd.f32 %v3012_v21, %v2904_v25  ;;  %v3031_v28 = vadd.f32 %v3020_v22, %v2990_v26  ;;  %v2906_v29 = vpop.f32.mrb[1].mxu0  ;;  %v2992_v30 = vpop.f32.mrb[1].mxu1  ;;  %v5788_v25 = vld [vmem:[#allocation7 + $0x30c] ss:$16 sps:$4 sm:$0xff]   ;;  %v5783_v26 = vld [vmem:[#allocation7 + $0x300] ss:$16 sps:$4 sm:$0xff]  }
 0x2af   :  { %v3030_v31 = vadd.f32 %v3016_v23, %v2906_v29  ;;  %v3032_v32 = vadd.f32 %v3024_v24, %v2992_v30  ;;  %v2908_v33 = vpop.f32.mrb[2].mxu0  ;;  %v2994_v34 = vpop.f32.mrb[2].mxu1  ;;  %v5794_v29 = vld [vmem:[#allocation7 + $0x32c] ss:$16 sps:$4 sm:$0xff]   ;;  %v5789_v30 = vld [vmem:[#allocation7 + $0x320] ss:$16 sps:$4 sm:$0xff]  }
 0x2b0   :  { %v3033_v35 = vadd.f32 %v3012_v21, %v2908_v33  ;;  %v3035_v36 = vadd.f32 %v3020_v22, %v2994_v34  ;;  %v2910_v37 = vpop.f32.mrb[3].mxu0  ;;  %v2996_v38 = vpop.f32.mrb[3].mxu1  ;;  %v3037_v41 = vmax.f32 %v3029_v27, 0.0  ;;  %v3039_v42 = vmax.f32 %v3031_v28, 0.0  ;;  %v5782_v21 = vld [vmem:[#allocation7 + $0x2ec] ss:$16 sps:$4 sm:$0xff]  }
 0x2b1   :  { %v3034_v39 = vadd.f32 %v3016_v23, %v2910_v37  ;;  %v3036_v40 = vadd.f32 %v3024_v24, %v2996_v38  ;;  %v3038_v45 = vmax.f32 %v3030_v31, 0.0  ;;  %v3040_v46 = vmax.f32 %v3032_v32, 0.0  ;;  %v5777_v22 = vld [vmem:[#allocation7 + $0x2e0] ss:$16 sps:$4 sm:$0xff]   ;;  %v5780_v23 = vld [vmem:[#allocation7 + $0x2e8] ss:$16 sps:$4 sm:$0xff]  }
 0x2b2   :  { %v3041_v43 = vmax.f32 %v3033_v35, 0.0  ;;  %v3043_v44 = vmax.f32 %v3035_v36, 0.0  ;;  %v5785_v24 = vld [vmem:[#allocation7 + $0x304] ss:$16 sps:$4 sm:$0xff]   ;;  %v5786_v27 = vld [vmem:[#allocation7 + $0x308] ss:$16 sps:$4 sm:$0xff]  }
 0x2b3   :  { %v3042_v47 = vmax.f32 %v3034_v39, 0.0  ;;  %v3044_v48 = vmax.f32 %v3036_v40, 0.0  ;;  %v5791_v28 = vld [vmem:[#allocation7 + $0x324] ss:$16 sps:$4 sm:$0xff]   ;;  %v5792_v31 = vld [vmem:[#allocation7 + $0x328] ss:$16 sps:$4 sm:$0xff]  }
 0x2b4   :  { %v3045_v49 = vpack.c.bf16 %v3041_v43, %v3037_v41  ;;  %v6191_v50 = vpack.c.bf16 %v3043_v44, %v3039_v42  ;;  %v5797_v32 = vld [vmem:[#allocation7 + $0x344] ss:$16 sps:$4 sm:$0xff]   ;;  %v5800_v33 = vld [vmem:[#allocation7 + $0x34c] ss:$16 sps:$4 sm:$0xff]   ;;  %v5795_v34 = vld [vmem:[#allocation7 + $0x340] ss:$16 sps:$4 sm:$0xff]  }
 0x2b5   :  { %v3046_v51 = vpack.c.bf16 %v3042_v47, %v3038_v45  ;;  %v3048_v52 = vpack.c.bf16 %v3044_v48, %v3040_v46  ;;  %v5798_v35 = vld [vmem:[#allocation7 + $0x348] ss:$16 sps:$4 sm:$0xff]   ;;  %v5803_v36 = vld [vmem:[#allocation7 + $0x364] ss:$16 sps:$4 sm:$0xff]   ;;  %v5806_v37 = vld [vmem:[#allocation7 + $0x36c] ss:$16 sps:$4 sm:$0xff]  }
 0x2b6   :  { %v5801_v38 = vld [vmem:[#allocation7 + $0x360] ss:$16 sps:$4 sm:$0xff]   ;;  %v5804_v39 = vld [vmem:[#allocation7 + $0x368] ss:$16 sps:$4 sm:$0xff]   ;;  %v5809_v40 = vld [vmem:[#allocation7 + $0x384] ss:$16 sps:$4 sm:$0xff]  }
 0x2b7   :  { %3871 = vmatprep.mubr.bf16.mxu0 %v3046_v51  ;;  %3957 = vmatprep.mubr.bf16.mxu1 %v3046_v51  ;;  %v5812_v41 = vld [vmem:[#allocation7 + $0x38c] ss:$16 sps:$4 sm:$0xff]   ;;  %v5807_v42 = vld [vmem:[#allocation7 + $0x380] ss:$16 sps:$4 sm:$0xff]   ;;  %v5810_v43 = vld [vmem:[#allocation7 + $0x388] ss:$16 sps:$4 sm:$0xff]  }
 0x2b8   :  { %3872 = vmatmul.mubr.bf16.vlgmr.msra.gmra.mrb[4].mxu0 %v3045_v49  ;;  %3958 = vmatmul.mubr.bf16.vlgmr.msra.gmra.mrb[4].mxu1 %v3045_v49  ;;  %v5815_v44 = vld [vmem:[#allocation7 + $0x3a4] ss:$16 sps:$4 sm:$0xff]   ;;  %v5818_v45 = vld [vmem:[#allocation7 + $0x3ac] ss:$16 sps:$4 sm:$0xff]   ;;  %v5813_v46 = vld [vmem:[#allocation7 + $0x3a0] ss:$16 sps:$4 sm:$0xff]  }
 0x2b9   :  { %3883 = vmatpush1.bf16.msra.mxu0 %v5735_v53  ;;  %3969 = vmatpush1.bf16.msra.mxu1 %v5738_v54  ;;  %v5816_v47 = vld [vmem:[#allocation7 + $0x3a8] ss:$16 sps:$4 sm:$0xff]   ;;  %v5821_v48 = vld [vmem:[#allocation7 + $0x3c4] ss:$16 sps:$4 sm:$0xff]   ;;  %v5824_v49 = vld [vmem:[#allocation7 + $0x3cc] ss:$16 sps:$4 sm:$0xff]  }
 0x2ba   :  { %3914 = vmatprep.mubr.bf16.mxu0 %v3048_v52  ;;  %4000 = vmatprep.mubr.bf16.mxu1 %v3048_v52  ;;  %v5819_v51 = vld [vmem:[#allocation7 + $0x3c0] ss:$16 sps:$4 sm:$0xff]   ;;  %v5822_v52 = vld [vmem:[#allocation7 + $0x3c8] ss:$16 sps:$4 sm:$0xff]   ;;  %v5827_v53 = vld [vmem:[#allocation7 + $0x3e4] ss:$16 sps:$4 sm:$0xff]  }
 0x2bb   :  { %3884 = vmatprep.subr.bf16.mxu0 %v5743_v55  ;;  %3970 = vmatprep.subr.bf16.mxu1 %v5746_v56  ;;  %v5830_v54 = vld [vmem:[#allocation7 + $0x3ec] ss:$16 sps:$4 sm:$0xff]   ;;  %v5825_v55 = vld [vmem:[#allocation7 + $0x3e0] ss:$16 sps:$4 sm:$0xff]   ;;  %v5828_v56 = vld [vmem:[#allocation7 + $0x3e8] ss:$16 sps:$4 sm:$0xff]  }
 0x2bd   :  { %3885 = vmatpush1.bf16.msra.mxu0 %v5741_v57  ;;  %3971 = vmatpush1.bf16.msra.mxu1 %v5744_v58  ;;  %v5831_v57 = vld [vmem:[#allocation9 + $0x40] sm:$0xff]  }
 0x2be   :  { %3886 = vmatprep.subr.bf16.mxu0 %v5749_v59  ;;  %3972 = vmatprep.subr.bf16.mxu1 %v5752_v60  ;;  %v5832_v58 = vld [vmem:[#allocation9 + $0xc0] sm:$0xff]  }
 0x2bf   :  { %v5833_v59 = vld [vmem:[#allocation9] sm:$0xff]  }
 0x2c0   :  { %v5834_v60 = vld [vmem:[#allocation9 + $0x80] sm:$0xff]  }
 0x2c1   :  { %3887 = vmatpush1.bf16.msra.mxu0 %v5747_v61  ;;  %3973 = vmatpush1.bf16.msra.mxu1 %v5750_v62  ;;  %v5835_v61 = vld [vmem:[#allocation9 + $0x48] sm:$0xff]  }
 0x2c2   :  { %3888 = vmatprep.subr.bf16.mxu0 %v5755_v63  ;;  %3974 = vmatprep.subr.bf16.mxu1 %v5758_v0  ;;  %v5836_v62 = vld [vmem:[#allocation9 + $0xc8] sm:$0xff]  }
 0x2c3   :  { %v5837_v63 = vld [vmem:[#allocation9 + $0x8] sm:$0xff]  }
 0x2c4   :  { %v5838_v0 = vld [vmem:[#allocation9 + $0x88] sm:$0xff]  }
 0x2c5   :  { %3889 = vmatpush1.bf16.msra.mxu0 %v5753_v1  ;;  %3975 = vmatpush1.bf16.msra.mxu1 %v5756_v2  ;;  %v5839_v1 = vld [vmem:[#allocation9 + $0x50] sm:$0xff]  }
 0x2c6   :  { %3890 = vmatprep.subr.bf16.mxu0 %v5761_v3  ;;  %3976 = vmatprep.subr.bf16.mxu1 %v5764_v4  ;;  %v5840_v2 = vld [vmem:[#allocation9 + $0xd0] sm:$0xff]  }
 0x2c7   :  { %v5841_v3 = vld [vmem:[#allocation9 + $0x10] sm:$0xff]  }
 0x2c8   :  { %v5842_v4 = vld [vmem:[#allocation9 + $0x90] sm:$0xff]  }
 0x2c9   :  { %3891 = vmatpush1.bf16.msra.mxu0 %v5759_v5  ;;  %3977 = vmatpush1.bf16.msra.mxu1 %v5762_v6  ;;  %v5843_v5 = vld [vmem:[#allocation9 + $0x58] sm:$0xff]  }
 0x2ca   :  { %3892 = vmatprep.subr.bf16.mxu0 %v5767_v7  ;;  %3978 = vmatprep.subr.bf16.mxu1 %v5770_v8  ;;  %v5844_v6 = vld [vmem:[#allocation9 + $0xd8] sm:$0xff]   ;;  %v5847_v8 = vld [vmem:[#allocation9 + $0x60] sm:$0xff]  }
 0x2cb   :  { %v5845_v7 = vld [vmem:[#allocation9 + $0x18] sm:$0xff]  }
 0x2cd   :  { %3893 = vmatpush1.bf16.msra.mxu0 %v5765_v9  ;;  %3979 = vmatpush1.bf16.msra.mxu1 %v5768_v10  ;;  %v5848_v9 = vld [vmem:[#allocation9 + $0xe0] sm:$0xff]  }
 0x2ce   :  { %3894 = vmatprep.subr.bf16.mxu0 %v5773_v11  ;;  %3980 = vmatprep.subr.bf16.mxu1 %v5776_v12  ;;  %v5849_v10 = vld [vmem:[#allocation9 + $0x20] sm:$0xff]   ;;  %v5851_v12 = vld [vmem:[#allocation9 + $0x68] sm:$0xff]  }
 0x2cf   :  { %v5850_v11 = vld [vmem:[#allocation9 + $0xa0] sm:$0xff]  }
 0x2d1   :  { %3895 = vmatpush1.bf16.msra.mxu0 %v5771_v13  ;;  %3981 = vmatpush1.bf16.msra.mxu1 %v5774_v14  ;;  %v5852_v13 = vld [vmem:[#allocation9 + $0xe8] sm:$0xff]  }
 0x2d2   :  { %3896 = vmatprep.subr.bf16.mxu0 %v5779_v18  ;;  %3982 = vmatprep.subr.bf16.mxu1 %v5782_v21  ;;  %v5853_v14 = vld [vmem:[#allocation9 + $0x28] sm:$0xff]   ;;  %v5855_v21 = vld [vmem:[#allocation9 + $0x70] sm:$0xff]  }
 0x2d3   :  { %v5854_v18 = vld [vmem:[#allocation9 + $0xa8] sm:$0xff]  }
 0x2d5   :  { %3897 = vmatpush1.bf16.msra.mxu0 %v5777_v22  ;;  %3983 = vmatpush1.bf16.msra.mxu1 %v5780_v23  ;;  %v5856_v22 = vld [vmem:[#allocation9 + $0xf0] sm:$0xff]  }
 0x2d6   :  { %3898 = vmatprep.subr.bf16.mxu0 %v5785_v24  ;;  %3984 = vmatprep.subr.bf16.mxu1 %v5788_v25  ;;  %v5857_v23 = vld [vmem:[#allocation9 + $0x30] sm:$0xff]   ;;  %v5859_v25 = vld [vmem:[#allocation9 + $0x78] sm:$0xff]  }
 0x2d7   :  { %v5858_v24 = vld [vmem:[#allocation9 + $0xb0] sm:$0xff]  }
 0x2d9   :  { %3899 = vmatpush1.bf16.msra.mxu0 %v5783_v26  ;;  %3985 = vmatpush1.bf16.msra.mxu1 %v5786_v27  ;;  %v5860_v26 = vld [vmem:[#allocation9 + $0xf8] sm:$0xff]  }
 0x2da   :  { %3900 = vmatprep.subr.bf16.mxu0 %v5791_v28  ;;  %3986 = vmatprep.subr.bf16.mxu1 %v5794_v29  ;;  %v5861_v27 = vld [vmem:[#allocation9 + $0x38] sm:$0xff]  }
 0x2db   :  { %v5862_v28 = vld [vmem:[#allocation9 + $0xb8] sm:$0xff]  }
 0x2dc   :  { %v3177_v29 = vld [vmem:[%s6223_s8] sm:$0xf] }
 0x2dd   :  { %3901 = vmatpush1.bf16.msra.mxu0 %v5789_v30  ;;  %3987 = vmatpush1.bf16.msra.mxu1 %v5792_v31  ;;  %v3182_v30 = vrot.slane %v3177_v29, %v3011_v16  ;;  %v3190_v31 = vrot.slane %v3177_v29, %v3019_v17 }
 0x2de   :  { %3902 = vmatprep.subr.bf16.mxu0 %v5797_v32  ;;  %3988 = vmatprep.subr.bf16.mxu1 %v5800_v33  ;;  %v3186_v32 = vrot.slane %v3177_v29, %v3015_v19  ;;  %v3194_v33 = vrot.slane %v3177_v29, %v3023_v20 }
 0x2e1   :  { %3903 = vmatpush1.bf16.msra.mxu0 %v5795_v34  ;;  %3989 = vmatpush1.bf16.msra.mxu1 %v5798_v35 }
 0x2e2   :  { %3904 = vmatprep.subr.bf16.mxu0 %v5803_v36  ;;  %3990 = vmatprep.subr.bf16.mxu1 %v5806_v37 }
 0x2e5   :  { %3905 = vmatpush1.bf16.msra.mxu0 %v5801_v38  ;;  %3991 = vmatpush1.bf16.msra.mxu1 %v5804_v39 }
 0x2e6   :  { %3906 = vmatprep.subr.bf16.mxu0 %v5809_v40  ;;  %3992 = vmatprep.subr.bf16.mxu1 %v5812_v41 }
 0x2e9   :  { %3907 = vmatpush1.bf16.msra.mxu0 %v5807_v42  ;;  %3993 = vmatpush1.bf16.msra.mxu1 %v5810_v43 }
 0x2ea   :  { %3908 = vmatprep.subr.bf16.mxu0 %v5815_v44  ;;  %3994 = vmatprep.subr.bf16.mxu1 %v5818_v45 }
 0x2ed   :  { %3909 = vmatpush1.bf16.msra.mxu0 %v5813_v46  ;;  %3995 = vmatpush1.bf16.msra.mxu1 %v5816_v47 }
 0x2ee   :  { %3910 = vmatprep.subr.bf16.mxu0 %v5821_v48  ;;  %3996 = vmatprep.subr.bf16.mxu1 %v5824_v49 }
 0x2f1   :  { %3911 = vmatpush1.bf16.msra.mxu0 %v5819_v51  ;;  %3997 = vmatpush1.bf16.msra.mxu1 %v5822_v52 }
 0x2f2   :  { %3912 = vmatprep.subr.bf16.mxu0 %v5827_v53  ;;  %3998 = vmatprep.subr.bf16.mxu1 %v5830_v54 }
 0x2f5   :  { %3913 = vmatpush1.bf16.msra.mxu0 %v5825_v55  ;;  %3999 = vmatpush1.bf16.msra.mxu1 %v5828_v56 }
 0x2f6   :  { %4936 = vmatprep.subr.bf16.mxu0 %v5831_v57  ;;  %4958 = vmatprep.subr.bf16.mxu1 %v5832_v58 }
 0x2f8   :  { %3915 = vmatmul.mubr.bf16.vlgmr.msra.gmra.mrb[4].mxu0 %v6191_v50  ;;  %4001 = vmatmul.mubr.bf16.vlgmr.msra.gmra.mrb[4].mxu1 %v6191_v50  ;;  %v5846_v50 = vld [vmem:[#allocation9 + $0x98] sm:$0xff]  }
 0x2f9   :  { %4937 = vmatpush3.bf16.msra.mxu0 %v5833_v59  ;;  %4959 = vmatpush3.bf16.msra.mxu1 %v5834_v60  ;;  %v4903_v60 = vld [vmem:[%s6225_s10] ss:$0 sm:$0xff] }
 0x2fa   :  { %4938 = vmatprep.subr.bf16.mxu0 %v5835_v61  ;;  %4960 = vmatprep.subr.bf16.mxu1 %v5836_v62 }
 0x2fd   :  { %4939 = vmatpush3.bf16.msra.mxu0 %v5837_v63  ;;  %4961 = vmatpush3.bf16.msra.mxu1 %v5838_v0 }
 0x2fe   :  { %4940 = vmatprep.subr.bf16.mxu0 %v5839_v1  ;;  %4962 = vmatprep.subr.bf16.mxu1 %v5840_v2 }
 0x301   :  { %4941 = vmatpush3.bf16.msra.mxu0 %v5841_v3  ;;  %4963 = vmatpush3.bf16.msra.mxu1 %v5842_v4 }
 0x302   :  { %4942 = vmatprep.subr.bf16.mxu0 %v5843_v5  ;;  %4964 = vmatprep.subr.bf16.mxu1 %v5844_v6 }
 0x305   :  { %4943 = vmatpush3.bf16.msra.mxu0 %v5845_v7  ;;  %4965 = vmatpush3.bf16.msra.mxu1 %v5846_v50 }
 0x306   :  { %4944 = vmatprep.subr.bf16.mxu0 %v5847_v8  ;;  %4966 = vmatprep.subr.bf16.mxu1 %v5848_v9 }
 0x309   :  { %4945 = vmatpush3.bf16.msra.mxu0 %v5849_v10  ;;  %4967 = vmatpush3.bf16.msra.mxu1 %v5850_v11 }
 0x30a   :  { %4946 = vmatprep.subr.bf16.mxu0 %v5851_v12  ;;  %4968 = vmatprep.subr.bf16.mxu1 %v5852_v13 }
 0x30d   :  { %4947 = vmatpush3.bf16.msra.mxu0 %v5853_v14  ;;  %4969 = vmatpush3.bf16.msra.mxu1 %v5854_v18 }
 0x30e   :  { %4948 = vmatprep.subr.bf16.mxu0 %v5855_v21  ;;  %4970 = vmatprep.subr.bf16.mxu1 %v5856_v22 }
 0x311   :  { %4949 = vmatpush3.bf16.msra.mxu0 %v5857_v23  ;;  %4971 = vmatpush3.bf16.msra.mxu1 %v5858_v24 }
 0x312   :  { %4950 = vmatprep.subr.bf16.mxu0 %v5859_v25  ;;  %4972 = vmatprep.subr.bf16.mxu1 %v5860_v26 }
 0x315   :  { %4951 = vmatpush3.bf16.msra.mxu0 %v5861_v27  ;;  %4973 = vmatpush3.bf16.msra.mxu1 %v5862_v28 }
 0x3cb   :  { %v3916_v34 = vpop.f32.mrb[4].mxu0  ;;  %v4002_v35 = vpop.f32.mrb[4].mxu1 }
 0x3cc   :  { %v4980_v36 = vadd.f32 %v3916_v34, %v3182_v30  ;;  %v4984_v37 = vadd.f32 %v4002_v35, %v3190_v31  ;;  %v3918_v38 = vpop.f32.mrb[5].mxu0  ;;  %v4004_v39 = vpop.f32.mrb[5].mxu1 }
 0x3cd   :  { %v4981_v40 = vadd.f32 %v3918_v38, %v3186_v32  ;;  %v4985_v41 = vadd.f32 %v4004_v39, %v3194_v33  ;;  %v3920_v42 = vpop.f32.mrb[6].mxu0  ;;  %v4006_v43 = vpop.f32.mrb[6].mxu1 }
 0x3ce   :  { %v4982_v16 = vadd.f32 %v3920_v42, %v3182_v30  ;;  %v4986_v44 = vadd.f32 %v4006_v43, %v3190_v31  ;;  %v3922_v45 = vpop.f32.mrb[7].mxu0  ;;  %v4008_v17 = vpop.f32.mrb[7].mxu1  ;;  %v4011_v19 = vmax.f32 %v4980_v36, 0.0  ;;  %v4013_v48 = vmax.f32 %v4984_v37, 0.0 }
 0x3cf   :  { %v4983_v46 = vadd.f32 %v3922_v45, %v3186_v32  ;;  %v4987_v47 = vadd.f32 %v4008_v17, %v3194_v33  ;;  %v4012_v49 = vmax.f32 %v4981_v40, 0.0  ;;  %v4014_v51 = vmax.f32 %v4985_v41, 0.0 }
 0x3d0   :  { %v4015_v15 = vmax.f32 %v4982_v16, 0.0  ;;  %v4017_v20 = vmax.f32 %v4986_v44, 0.0 }
 0x3d1   :  { %v4016_v52 = vmax.f32 %v4983_v46, 0.0  ;;  %v4018_v53 = vmax.f32 %v4987_v47, 0.0 }
 0x3d2   :  { %v4019_v54 = vpack.c.bf16 %v4015_v15, %v4011_v19  ;;  %v4021_v55 = vpack.c.bf16 %v4017_v20, %v4013_v48 }
 0x3d3   :  { %v4020_v56 = vpack.c.bf16 %v4016_v52, %v4012_v49  ;;  %v4022_v57 = vpack.c.bf16 %v4018_v53, %v4014_v51 }
 0x3d5   :  { %4318 = vmatprep.mubr.bf16.mxu0 %v4020_v56  ;;  %4359 = vmatprep.mubr.bf16.mxu1 %v4022_v57 }
 0x3d6   :  { %4319 = vmatmul.mubr.bf16.vlgmr.msra.gmra.mrb[8].mxu0 %v4019_v54  ;;  %4360 = vmatmul.mubr.bf16.vlgmr.msra.gmra.mrb[8].mxu1 %v4021_v55 }
 0x4a9   :  { %v4952_v58 = vpop.f32.mrb[8].mxu0  ;;  %v4974_v59 = vpop.f32.mrb[8].mxu1 }
 0x4aa   :  { %v4953_v61 = vpop.f32.mrb[9].mxu0  ;;  %v4975_v62 = vpop.f32.mrb[9].mxu1 }
 0x4ab   :  { %v4954_v63 = vadd.f32 %v4953_v61, %v4952_v58  ;;  %v4976_v0 = vadd.f32 %v4975_v62, %v4974_v59  ;;  %v4955_v1 = vpop.f32.mrb[10].mxu0  ;;  %v4977_v2 = vpop.f32.mrb[10].mxu1 }
 0x4ac   :  { %v4956_v3 = vpop.f32.mrb[11].mxu0  ;;  %v4978_v4 = vpop.f32.mrb[11].mxu1 }
 0x4ad   :  { %v4321_v5 = vadd.f32 %v4954_v63, %v4903_v60  ;;  %v4957_v6 = vadd.f32 %v4956_v3, %v4955_v1  ;;  %v4979_v7 = vadd.f32 %v4978_v4, %v4977_v2 }
 0x4af   :  { %v4362_v50 = vadd.f32 %v4976_v0, %v4321_v5  ;;  %v4324_v8 = vadd.f32 %v4957_v6, %v4903_v60 }
 0x4b1   :  { %5863 = vtanh.f32 %v4362_v50  ;;  %v4365_v9 = vadd.f32 %v4979_v7, %v4324_v8 }
 0x4b3   :  { %5865 = vtanh.f32 %v4365_v9 }
 0x4bb   :  { %v5864_v10 = vpop.eup %5863 }
 0x4bc   :  { %4370 = vst [vmem:[%s6226_s11] sm:$0xff] %v5864_v10 }
 0x4bd   :  { %v5866_v11 = vpop.eup %5865 }
 0x4be   :  { %4371 = vst [vmem:[%s6226_s11 + $0x8] sm:$0xff] %v5866_v11 }
 0x4bf   :  { %4376 = vsyncpa [#allocation3], 1 }
 0x4c0   :  { %4377 = vsyncpa [#allocation5], 1 }
 0x4c1   :  { %4378 = vsyncpa [#allocation8], 1 }

</bundles_post_ra>
